<compile_context>
chip_gen: v7x
topology: tpu7x:2x2x1
jax: 0.10.0
libtpu: 0.0.40
codegen_flags: <defaults>
</compile_context>

<pallas_src>
import functools

import jax
import jax.numpy as jnp
from jax import lax
from jax.experimental import pallas as pl
from jax.experimental.pallas import tpu as pltpu

LANE = 128  # TPU lane width


def _round_up(x, m):
    return (x + m - 1) // m * m


def _pad_last(v, c):
    return jnp.pad(v, ((0, 0), (0, c - v.shape[-1])))


def _const_spec(shape):
    # full-array block that never changes with the grid index (no re-DMA)
    return pl.BlockSpec(shape, lambda i: (0,) * len(shape))


# ----------------------------------------------------------------------------
# Fused BasicBlock kernel (one grid step == one image)
# ----------------------------------------------------------------------------
def _basic_block_kernel(*refs, stride, ho, wo, has_proj):
    if has_proj:
        (x_ref, w1_ref, s1_ref, b1_ref, w2_ref, s2_ref, b2_ref,
         ws_ref, ss_ref, bs_ref, o_ref, o1_ref) = refs
    else:
        (x_ref, w1_ref, s1_ref, b1_ref, w2_ref, s2_ref, b2_ref,
         o_ref, o1_ref) = refs

    s = stride
    m = ho * wo
    cin_p = x_ref.shape[-1]
    cout_p = o_ref.shape[-1]

    def x_window(ky, kx):
        # x_pad[ky + s*i, kx + s*j, :] for all output pixels (i, j).
        # The stride-phase layout makes this a unit-stride window load.
        return x_ref[(ky % s) * s + (kx % s),
                     pl.ds(ky // s, ho), pl.ds(kx // s, wo), :]

    # ---- conv1 (3x3, stride s): 9 shifted bf16 matmuls, f32 accumulation ----
    acc = jnp.zeros((m, cout_p), jnp.float32)
    for ky in range(3):
        for kx in range(3):
            a = x_window(ky, kx).reshape(m, cin_p)
            acc = acc + jnp.dot(a, w1_ref[ky * 3 + kx],
                                preferred_element_type=jnp.float32)
    out1 = jnp.maximum(acc * s1_ref[...] + b1_ref[...], 0.0)   # BN1 + ReLU (f32)

    # Stage conv1 output with a zero halo in VMEM for conv2's 3x3 windows.
    # (Re-zeroed every step: scratch is per-core under megacore sharding.)
    o1_ref[...] = jnp.zeros(o1_ref.shape, o1_ref.dtype)
    o1_ref[pl.ds(1, ho), pl.ds(1, wo), :] = out1.reshape(ho, wo, cout_p)

    # ---- conv2 (3x3, stride 1) + BN2 ----------------------------------------
    acc2 = jnp.zeros((m, cout_p), jnp.float32)
    for ky in range(3):
        for kx in range(3):
            a = o1_ref[pl.ds(ky, ho), pl.ds(kx, wo), :].reshape(m, cout_p)
            acc2 = acc2 + jnp.dot(a.astype(jnp.bfloat16), w2_ref[ky * 3 + kx],
                                  preferred_element_type=jnp.float32)
    out2 = acc2 * s2_ref[...] + b2_ref[...]

    # ---- shortcut (fused): 1x1 stride-s projection + BN, or identity --------
    xs = x_window(1, 1).reshape(m, cin_p)          # == x[s*i, s*j, :]
    if has_proj:
        sc = jnp.dot(xs, ws_ref[...], preferred_element_type=jnp.float32)
        sc = sc * ss_ref[...] + bs_ref[...]
    else:
        sc = xs.astype(jnp.float32)

    # ---- residual add + final ReLU ------------------------------------------
    o_ref[...] = jnp.maximum(out2 + sc, 0.0).reshape(ho, wo, cout_p)


# ----------------------------------------------------------------------------
# JAX-side glue: BN folding, padding / stride-phase layout, parameter init
# ----------------------------------------------------------------------------
def fold_bn(gamma, beta, mean, var, eps=1e-5):
    scale = gamma / jnp.sqrt(var + eps)
    bias = beta - mean * scale
    return scale.reshape(1, -1), bias.reshape(1, -1)


def init_params(key, cin, cout, stride):
    ks = jax.random.split(key, 6)

    def bn(k):
        k1, k2, k3, k4 = jax.random.split(k, 4)
        gamma = (1.0 + 0.1 * jax.random.normal(k1, (cout,))).astype(jnp.float32)
        beta = (0.1 * jax.random.normal(k2, (cout,))).astype(jnp.float32)
        mean = (0.1 * jax.random.normal(k3, (cout,))).astype(jnp.float32)
        var = (1.0 + 0.2 * jnp.abs(jax.random.normal(k4, (cout,)))).astype(jnp.float32)
        return (gamma, beta, mean, var)

    p = {
        "w1": 0.1 * jax.random.normal(ks[0], (3, 3, cin, cout), jnp.float32),   # HWIO
        "bn1": bn(ks[1]),
        "w2": 0.1 * jax.random.normal(ks[2], (3, 3, cout, cout), jnp.float32),  # HWIO
        "bn2": bn(ks[3]),
    }
    if stride != 1 or cin != cout:
        p["ws"] = 0.1 * jax.random.normal(ks[4], (cin, cout), jnp.float32)      # 1x1 conv
        p["bns"] = bn(ks[5])
    return p


def basic_block_forward(x_nchw, params, *, stride):
    s = int(stride)
    x = jnp.transpose(x_nchw, (0, 2, 3, 1)).astype(jnp.float32)   # NCHW -> NHWC
    n, h, w, cin = x.shape
    cout = params["w1"].shape[-1]
    cin_p = _round_up(cin, LANE)
    cout_p = _round_up(cout, LANE)
    ho = (h - 1) // s + 1
    wo = (w - 1) // s + 1
    hp = _round_up(h + 2, s)
    wp = _round_up(w + 2, s)
    has_proj = (s != 1) or (cin != cout)

    # conv padding=1 (plus <=s-1 unread rows/cols so the phase reshape divides),
    # channels padded to a lane-dense multiple of 128, bf16 for the MXU.
    xp = jnp.pad(x, ((0, 0), (1, hp - h - 1), (1, wp - w - 1), (0, cin_p - cin)))
    xp = xp.astype(jnp.bfloat16)
    # Stride-phase decomposition: every in-kernel 3x3/1x1 window becomes a
    # unit-stride slice.  xph[(b*s+py)*s+px, a, c, :] == x_pad[b, a*s+py, c*s+px, :]
    xph = xp.reshape(n, hp // s, s, wp // s, s, cin_p)
    xph = xph.transpose(0, 2, 4, 1, 3, 5).reshape(n * s * s, hp // s, wp // s, cin_p)

    w1 = jnp.pad(params["w1"], ((0, 0), (0, 0), (0, cin_p - cin), (0, cout_p - cout)))
    w1 = w1.reshape(9, cin_p, cout_p).astype(jnp.bfloat16)
    w2 = jnp.pad(params["w2"], ((0, 0), (0, 0), (0, cout_p - cout), (0, cout_p - cout)))
    w2 = w2.reshape(9, cout_p, cout_p).astype(jnp.bfloat16)
    s1, b1 = fold_bn(*params["bn1"]); s1 = _pad_last(s1, cout_p); b1 = _pad_last(b1, cout_p)
    s2, b2 = fold_bn(*params["bn2"]); s2 = _pad_last(s2, cout_p); b2 = _pad_last(b2, cout_p)

    inputs = [xph, w1, s1, b1, w2, s2, b2]
    in_specs = [
        pl.BlockSpec((s * s, hp // s, wp // s, cin_p), lambda i: (i, 0, 0, 0)),
        _const_spec(w1.shape), _const_spec(s1.shape), _const_spec(b1.shape),
        _const_spec(w2.shape), _const_spec(s2.shape), _const_spec(b2.shape),
    ]
    if has_proj:
        ws = jnp.pad(params["ws"], ((0, cin_p - cin), (0, cout_p - cout))).astype(jnp.bfloat16)
        ss, bs = fold_bn(*params["bns"]); ss = _pad_last(ss, cout_p); bs = _pad_last(bs, cout_p)
        inputs += [ws, ss, bs]
        in_specs += [_const_spec(ws.shape), _const_spec(ss.shape), _const_spec(bs.shape)]

    kern = functools.partial(_basic_block_kernel,
                             stride=s, ho=ho, wo=wo, has_proj=has_proj)
    out = pl.pallas_call(
        kern,
        out_shape=jax.ShapeDtypeStruct((n, ho, wo, cout_p), jnp.float32),
        grid=(n,),
        in_specs=in_specs,
        out_specs=pl.BlockSpec((None, ho, wo, cout_p), lambda i: (i, 0, 0, 0)),
        scratch_shapes=[pltpu.VMEM((ho + 2, wo + 2, cout_p), jnp.float32)],
        compiler_params=pltpu.CompilerParams(
            dimension_semantics=("parallel",),            # megacore over batch
            vmem_limit_bytes=48 * 1024 * 1024,            # fits v7x's 64 MiB too
        ),
    )(*inputs)

    out = out[..., :cout]                        # drop lane padding
    return jnp.transpose(out, (0, 3, 1, 2))      # NHWC -> NCHW


# ----------------------------------------------------------------------------
# Pure-JAX reference (correctness check)
# ----------------------------------------------------------------------------
def reference_forward(x_nchw, params, stride):
    x = jnp.transpose(x_nchw, (0, 2, 3, 1)).astype(jnp.float32)
    dn = ("NHWC", "HWIO", "NHWC")

    def bn_apply(y, bnp):
        g, b, m, v = bnp
        return (y - m) / jnp.sqrt(v + 1e-5) * g + b

    o = lax.conv_general_dilated(x, params["w1"], (stride, stride),
                                 ((1, 1), (1, 1)), dimension_numbers=dn)
    o = jax.nn.relu(bn_apply(o, params["bn1"]))
    o = lax.conv_general_dilated(o, params["w2"], (1, 1),
                                 ((1, 1), (1, 1)), dimension_numbers=dn)
    o = bn_apply(o, params["bn2"])
    if "ws" in params:
        ws = params["ws"].reshape(1, 1, *params["ws"].shape)
        sc = lax.conv_general_dilated(x, ws, (stride, stride),
                                      ((0, 0), (0, 0)), dimension_numbers=dn)
        sc = bn_apply(sc, params["bns"])
    else:
        sc = x
    return jnp.transpose(jax.nn.relu(o + sc), (0, 3, 1, 2))


# ----------------------------------------------------------------------------
if __name__ == "__main__":
    key = jax.random.PRNGKey(0)
    kx_, kp1, kp2 = jax.random.split(key, 3)

    # input: NCHW, batch=2, channels=4, spatial=16
    x = jax.random.normal(kx_, (2, 4, 16, 16), jnp.float32)

    # case 1: downsample block (stride=2, 4 -> 8 channels, 1x1-conv shortcut)
    params_ds = init_params(kp1, cin=4, cout=8, stride=2)
    fwd_ds = jax.jit(functools.partial(basic_block_forward, stride=2))
    out_ds = jax.block_until_ready(fwd_ds(x, params_ds))
    ref_ds = reference_forward(x, params_ds, stride=2)
    assert out_ds.shape == (2, 8, 8, 8)
    # bf16 MXU inputs -> widened tolerance vs. pure-f32 reference
    assert jnp.allclose(out_ds, ref_ds, rtol=5e-2, atol=5e-2), \
        float(jnp.max(jnp.abs(out_ds - ref_ds)))

    # case 2: identity-shortcut block (stride=1, 4 -> 4 channels)
    params_id = init_params(kp2, cin=4, cout=4, stride=1)
    fwd_id = jax.jit(functools.partial(basic_block_forward, stride=1))
    out_id = jax.block_until_ready(fwd_id(x, params_id))
    ref_id = reference_forward(x, params_id, stride=1)
    assert out_id.shape == (2, 4, 16, 16)
    assert jnp.allclose(out_id, ref_id, rtol=5e-2, atol=5e-2), \
        float(jnp.max(jnp.abs(out_id - ref_id)))

    print("KERNEL_OK")
</pallas_src>

<mosaic_0001>
module attributes {stable_mosaic.version = 11 : i64} {
  func.func @_basic_block_kernel(%arg0: i32, %arg1: memref<4x9x9x128xbf16, #tpu.memory_space<vmem>>, %arg2: memref<9x128x128xbf16, #tpu.memory_space<vmem>>, %arg3: memref<1x128xf32, #tpu.memory_space<vmem>>, %arg4: memref<1x128xf32, #tpu.memory_space<vmem>>, %arg5: memref<9x128x128xbf16, #tpu.memory_space<vmem>>, %arg6: memref<1x128xf32, #tpu.memory_space<vmem>>, %arg7: memref<1x128xf32, #tpu.memory_space<vmem>>, %arg8: memref<128x128xbf16, #tpu.memory_space<vmem>>, %arg9: memref<1x128xf32, #tpu.memory_space<vmem>>, %arg10: memref<1x128xf32, #tpu.memory_space<vmem>>, %arg11: memref<1x8x8x128xf32, #tpu.memory_space<vmem>>, %arg12: memref<10x10x128xf32, #tpu.memory_space<vmem>>) attributes {dimension_semantics = [#tpu.dimension_semantics<parallel>], iteration_bounds = array<i64: 2>, scalar_prefetch = 0 : i64, scratch_operands = 1 : i64, tpu.core_type = #tpu.core_type<tc>, window_params = [{transform_indices = @transform_0, window_bounds = array<i64: 4, 9, 9, 128>}, {pipeline_mode = #tpu.pipeline_mode<synchronous>, transform_indices = @transform_1, window_bounds = array<i64: 9, 128, 128>}, {pipeline_mode = #tpu.pipeline_mode<synchronous>, transform_indices = @transform_2, window_bounds = array<i64: 1, 128>}, {pipeline_mode = #tpu.pipeline_mode<synchronous>, transform_indices = @transform_3, window_bounds = array<i64: 1, 128>}, {pipeline_mode = #tpu.pipeline_mode<synchronous>, transform_indices = @transform_4, window_bounds = array<i64: 9, 128, 128>}, {pipeline_mode = #tpu.pipeline_mode<synchronous>, transform_indices = @transform_5, window_bounds = array<i64: 1, 128>}, {pipeline_mode = #tpu.pipeline_mode<synchronous>, transform_indices = @transform_6, window_bounds = array<i64: 1, 128>}, {pipeline_mode = #tpu.pipeline_mode<synchronous>, transform_indices = @transform_7, window_bounds = array<i64: 128, 128>}, {pipeline_mode = #tpu.pipeline_mode<synchronous>, transform_indices = @transform_8, window_bounds = array<i64: 1, 128>}, {pipeline_mode = #tpu.pipeline_mode<synchronous>, transform_indices = @transform_9, window_bounds = array<i64: 1, 128>}, {transform_indices = @transform_10, window_bounds = array<i64: 1, 8, 8, 128>}]} {
    %cst = arith.constant 0.000000e+00 : f32
    %0 = vector.broadcast %cst : f32 to vector<64x128xf32>
    %c0 = arith.constant 0 : index
    %c0_0 = arith.constant 0 : index
    %c0_1 = arith.constant 0 : index
    %c0_2 = arith.constant 0 : index
    %1 = vector.load %arg1[%c0, %c0_0, %c0_1, %c0_2] : memref<4x9x9x128xbf16, #tpu.memory_space<vmem>>, vector<1x8x8x128xbf16>
    %2 = vector.shape_cast %1 : vector<1x8x8x128xbf16> to vector<8x8x128xbf16>
    %3 = vector.shape_cast %2 : vector<8x8x128xbf16> to vector<64x128xbf16>
    %c0_3 = arith.constant 0 : index
    %c0_4 = arith.constant 0 : index
    %c0_5 = arith.constant 0 : index
    %4 = vector.load %arg2[%c0_3, %c0_4, %c0_5] : memref<9x128x128xbf16, #tpu.memory_space<vmem>>, vector<1x128x128xbf16>
    %5 = vector.shape_cast %4 : vector<1x128x128xbf16> to vector<128x128xbf16>
    %cst_6 = arith.constant dense<0.000000e+00> : vector<64x128xf32>
    %6 = tpu.matmul %3, %5, %cst_6 {dimension_numbers = #tpu.dot_dimension_numbers<[1], [0], [0], [1], [0, 0, 1, 1], [], []>} : vector<64x128xbf16>, vector<128x128xbf16>, vector<64x128xf32> -> vector<64x128xf32>
    %7 = arith.addf %0, %6 : vector<64x128xf32>
    %c1 = arith.constant 1 : index
    %c0_7 = arith.constant 0 : index
    %c0_8 = arith.constant 0 : index
    %c0_9 = arith.constant 0 : index
    %8 = vector.load %arg1[%c1, %c0_7, %c0_8, %c0_9] : memref<4x9x9x128xbf16, #tpu.memory_space<vmem>>, vector<1x8x8x128xbf16>
    %9 = vector.shape_cast %8 : vector<1x8x8x128xbf16> to vector<8x8x128xbf16>
    %10 = vector.shape_cast %9 : vector<8x8x128xbf16> to vector<64x128xbf16>
    %c1_10 = arith.constant 1 : index
    %c0_11 = arith.constant 0 : index
    %c0_12 = arith.constant 0 : index
    %11 = vector.load %arg2[%c1_10, %c0_11, %c0_12] : memref<9x128x128xbf16, #tpu.memory_space<vmem>>, vector<1x128x128xbf16>
    %12 = vector.shape_cast %11 : vector<1x128x128xbf16> to vector<128x128xbf16>
    %cst_13 = arith.constant dense<0.000000e+00> : vector<64x128xf32>
    %13 = tpu.matmul %10, %12, %cst_13 {dimension_numbers = #tpu.dot_dimension_numbers<[1], [0], [0], [1], [0, 0, 1, 1], [], []>} : vector<64x128xbf16>, vector<128x128xbf16>, vector<64x128xf32> -> vector<64x128xf32>
    %14 = arith.addf %7, %13 : vector<64x128xf32>
    %c0_14 = arith.constant 0 : index
    %c0_15 = arith.constant 0 : index
    %c1_16 = arith.constant 1 : index
    %c0_17 = arith.constant 0 : index
    %15 = vector.load %arg1[%c0_14, %c0_15, %c1_16, %c0_17] : memref<4x9x9x128xbf16, #tpu.memory_space<vmem>>, vector<1x8x8x128xbf16>
    %16 = vector.shape_cast %15 : vector<1x8x8x128xbf16> to vector<8x8x128xbf16>
    %17 = vector.shape_cast %16 : vector<8x8x128xbf16> to vector<64x128xbf16>
    %c2 = arith.constant 2 : index
    %c0_18 = arith.constant 0 : index
    %c0_19 = arith.constant 0 : index
    %18 = vector.load %arg2[%c2, %c0_18, %c0_19] : memref<9x128x128xbf16, #tpu.memory_space<vmem>>, vector<1x128x128xbf16>
    %19 = vector.shape_cast %18 : vector<1x128x128xbf16> to vector<128x128xbf16>
    %cst_20 = arith.constant dense<0.000000e+00> : vector<64x128xf32>
    %20 = tpu.matmul %17, %19, %cst_20 {dimension_numbers = #tpu.dot_dimension_numbers<[1], [0], [0], [1], [0, 0, 1, 1], [], []>} : vector<64x128xbf16>, vector<128x128xbf16>, vector<64x128xf32> -> vector<64x128xf32>
    %21 = arith.addf %14, %20 : vector<64x128xf32>
    %c2_21 = arith.constant 2 : index
    %c0_22 = arith.constant 0 : index
    %c0_23 = arith.constant 0 : index
    %c0_24 = arith.constant 0 : index
    %22 = vector.load %arg1[%c2_21, %c0_22, %c0_23, %c0_24] : memref<4x9x9x128xbf16, #tpu.memory_space<vmem>>, vector<1x8x8x128xbf16>
    %23 = vector.shape_cast %22 : vector<1x8x8x128xbf16> to vector<8x8x128xbf16>
    %24 = vector.shape_cast %23 : vector<8x8x128xbf16> to vector<64x128xbf16>
    %c3 = arith.constant 3 : index
    %c0_25 = arith.constant 0 : index
    %c0_26 = arith.constant 0 : index
    %25 = vector.load %arg2[%c3, %c0_25, %c0_26] : memref<9x128x128xbf16, #tpu.memory_space<vmem>>, vector<1x128x128xbf16>
    %26 = vector.shape_cast %25 : vector<1x128x128xbf16> to vector<128x128xbf16>
    %cst_27 = arith.constant dense<0.000000e+00> : vector<64x128xf32>
    %27 = tpu.matmul %24, %26, %cst_27 {dimension_numbers = #tpu.dot_dimension_numbers<[1], [0], [0], [1], [0, 0, 1, 1], [], []>} : vector<64x128xbf16>, vector<128x128xbf16>, vector<64x128xf32> -> vector<64x128xf32>
    %28 = arith.addf %21, %27 : vector<64x128xf32>
    %c3_28 = arith.constant 3 : index
    %c0_29 = arith.constant 0 : index
    %c0_30 = arith.constant 0 : index
    %c0_31 = arith.constant 0 : index
    %29 = vector.load %arg1[%c3_28, %c0_29, %c0_30, %c0_31] : memref<4x9x9x128xbf16, #tpu.memory_space<vmem>>, vector<1x8x8x128xbf16>
    %30 = vector.shape_cast %29 : vector<1x8x8x128xbf16> to vector<8x8x128xbf16>
    %31 = vector.shape_cast %30 : vector<8x8x128xbf16> to vector<64x128xbf16>
    %c4 = arith.constant 4 : index
    %c0_32 = arith.constant 0 : index
    %c0_33 = arith.constant 0 : index
    %32 = vector.load %arg2[%c4, %c0_32, %c0_33] : memref<9x128x128xbf16, #tpu.memory_space<vmem>>, vector<1x128x128xbf16>
    %33 = vector.shape_cast %32 : vector<1x128x128xbf16> to vector<128x128xbf16>
    %cst_34 = arith.constant dense<0.000000e+00> : vector<64x128xf32>
    %34 = tpu.matmul %31, %33, %cst_34 {dimension_numbers = #tpu.dot_dimension_numbers<[1], [0], [0], [1], [0, 0, 1, 1], [], []>} : vector<64x128xbf16>, vector<128x128xbf16>, vector<64x128xf32> -> vector<64x128xf32>
    %35 = arith.addf %28, %34 : vector<64x128xf32>
    %c2_35 = arith.constant 2 : index
    %c0_36 = arith.constant 0 : index
    %c1_37 = arith.constant 1 : index
    %c0_38 = arith.constant 0 : index
    %36 = vector.load %arg1[%c2_35, %c0_36, %c1_37, %c0_38] : memref<4x9x9x128xbf16, #tpu.memory_space<vmem>>, vector<1x8x8x128xbf16>
    %37 = vector.shape_cast %36 : vector<1x8x8x128xbf16> to vector<8x8x128xbf16>
    %38 = vector.shape_cast %37 : vector<8x8x128xbf16> to vector<64x128xbf16>
    %c5 = arith.constant 5 : index
    %c0_39 = arith.constant 0 : index
    %c0_40 = arith.constant 0 : index
    %39 = vector.load %arg2[%c5, %c0_39, %c0_40] : memref<9x128x128xbf16, #tpu.memory_space<vmem>>, vector<1x128x128xbf16>
    %40 = vector.shape_cast %39 : vector<1x128x128xbf16> to vector<128x128xbf16>
    %cst_41 = arith.constant dense<0.000000e+00> : vector<64x128xf32>
    %41 = tpu.matmul %38, %40, %cst_41 {dimension_numbers = #tpu.dot_dimension_numbers<[1], [0], [0], [1], [0, 0, 1, 1], [], []>} : vector<64x128xbf16>, vector<128x128xbf16>, vector<64x128xf32> -> vector<64x128xf32>
    %42 = arith.addf %35, %41 : vector<64x128xf32>
    %c0_42 = arith.constant 0 : index
    %c1_43 = arith.constant 1 : index
    %c0_44 = arith.constant 0 : index
    %c0_45 = arith.constant 0 : index
    %43 = vector.load %arg1[%c0_42, %c1_43, %c0_44, %c0_45] : memref<4x9x9x128xbf16, #tpu.memory_space<vmem>>, vector<1x8x8x128xbf16>
    %44 = vector.shape_cast %43 : vector<1x8x8x128xbf16> to vector<8x8x128xbf16>
    %45 = vector.shape_cast %44 : vector<8x8x128xbf16> to vector<64x128xbf16>
    %c6 = arith.constant 6 : index
    %c0_46 = arith.constant 0 : index
    %c0_47 = arith.constant 0 : index
    %46 = vector.load %arg2[%c6, %c0_46, %c0_47] : memref<9x128x128xbf16, #tpu.memory_space<vmem>>, vector<1x128x128xbf16>
    %47 = vector.shape_cast %46 : vector<1x128x128xbf16> to vector<128x128xbf16>
    %cst_48 = arith.constant dense<0.000000e+00> : vector<64x128xf32>
    %48 = tpu.matmul %45, %47, %cst_48 {dimension_numbers = #tpu.dot_dimension_numbers<[1], [0], [0], [1], [0, 0, 1, 1], [], []>} : vector<64x128xbf16>, vector<128x128xbf16>, vector<64x128xf32> -> vector<64x128xf32>
    %49 = arith.addf %42, %48 : vector<64x128xf32>
    %c1_49 = arith.constant 1 : index
    %c1_50 = arith.constant 1 : index
    %c0_51 = arith.constant 0 : index
    %c0_52 = arith.constant 0 : index
    %50 = vector.load %arg1[%c1_49, %c1_50, %c0_51, %c0_52] : memref<4x9x9x128xbf16, #tpu.memory_space<vmem>>, vector<1x8x8x128xbf16>
    %51 = vector.shape_cast %50 : vector<1x8x8x128xbf16> to vector<8x8x128xbf16>
    %52 = vector.shape_cast %51 : vector<8x8x128xbf16> to vector<64x128xbf16>
    %c7 = arith.constant 7 : index
    %c0_53 = arith.constant 0 : index
    %c0_54 = arith.constant 0 : index
    %53 = vector.load %arg2[%c7, %c0_53, %c0_54] : memref<9x128x128xbf16, #tpu.memory_space<vmem>>, vector<1x128x128xbf16>
    %54 = vector.shape_cast %53 : vector<1x128x128xbf16> to vector<128x128xbf16>
    %cst_55 = arith.constant dense<0.000000e+00> : vector<64x128xf32>
    %55 = tpu.matmul %52, %54, %cst_55 {dimension_numbers = #tpu.dot_dimension_numbers<[1], [0], [0], [1], [0, 0, 1, 1], [], []>} : vector<64x128xbf16>, vector<128x128xbf16>, vector<64x128xf32> -> vector<64x128xf32>
    %56 = arith.addf %49, %55 : vector<64x128xf32>
    %c0_56 = arith.constant 0 : index
    %c1_57 = arith.constant 1 : index
    %c1_58 = arith.constant 1 : index
    %c0_59 = arith.constant 0 : index
    %57 = vector.load %arg1[%c0_56, %c1_57, %c1_58, %c0_59] : memref<4x9x9x128xbf16, #tpu.memory_space<vmem>>, vector<1x8x8x128xbf16>
    %58 = vector.shape_cast %57 : vector<1x8x8x128xbf16> to vector<8x8x128xbf16>
    %59 = vector.shape_cast %58 : vector<8x8x128xbf16> to vector<64x128xbf16>
    %c8 = arith.constant 8 : index
    %c0_60 = arith.constant 0 : index
    %c0_61 = arith.constant 0 : index
    %60 = vector.load %arg2[%c8, %c0_60, %c0_61] : memref<9x128x128xbf16, #tpu.memory_space<vmem>>, vector<1x128x128xbf16>
    %61 = vector.shape_cast %60 : vector<1x128x128xbf16> to vector<128x128xbf16>
    %cst_62 = arith.constant dense<0.000000e+00> : vector<64x128xf32>
    %62 = tpu.matmul %59, %61, %cst_62 {dimension_numbers = #tpu.dot_dimension_numbers<[1], [0], [0], [1], [0, 0, 1, 1], [], []>} : vector<64x128xbf16>, vector<128x128xbf16>, vector<64x128xf32> -> vector<64x128xf32>
    %63 = arith.addf %56, %62 : vector<64x128xf32>
    %c0_63 = arith.constant 0 : index
    %c0_64 = arith.constant 0 : index
    %64 = vector.load %arg3[%c0_63, %c0_64] : memref<1x128xf32, #tpu.memory_space<vmem>>, vector<1x128xf32>
    %65 = vector.broadcast %64 : vector<1x128xf32> to vector<64x128xf32>
    %66 = arith.mulf %63, %65 : vector<64x128xf32>
    %c0_65 = arith.constant 0 : index
    %c0_66 = arith.constant 0 : index
    %67 = vector.load %arg4[%c0_65, %c0_66] : memref<1x128xf32, #tpu.memory_space<vmem>>, vector<1x128xf32>
    %68 = vector.broadcast %67 : vector<1x128xf32> to vector<64x128xf32>
    %69 = arith.addf %66, %68 : vector<64x128xf32>
    %cst_67 = arith.constant 0.000000e+00 : f32
    %70 = vector.broadcast %cst_67 : f32 to vector<64x128xf32>
    %71 = arith.maximumf %69, %70 : vector<64x128xf32>
    %cst_68 = arith.constant 0.000000e+00 : f32
    %72 = vector.broadcast %cst_68 : f32 to vector<10x10x128xf32>
    %c0_69 = arith.constant 0 : index
    %c0_70 = arith.constant 0 : index
    %c0_71 = arith.constant 0 : index
    %73 = vector.load %arg12[%c0_69, %c0_70, %c0_71] : memref<10x10x128xf32, #tpu.memory_space<vmem>>, vector<10x10x128xf32>
    tpu.vector_store %arg12[%c0_69, %c0_70, %c0_71], %72 {strides = array<i32>} : memref<10x10x128xf32, #tpu.memory_space<vmem>>, vector<10x10x128xf32>,
    %74 = vector.shape_cast %71 : vector<64x128xf32> to vector<8x8x128xf32>
    %c1_72 = arith.constant 1 : index
    %c1_73 = arith.constant 1 : index
    %c0_74 = arith.constant 0 : index
    %75 = vector.load %arg12[%c1_72, %c1_73, %c0_74] : memref<10x10x128xf32, #tpu.memory_space<vmem>>, vector<8x8x128xf32>
    tpu.vector_store %arg12[%c1_72, %c1_73, %c0_74], %74 {strides = array<i32>} : memref<10x10x128xf32, #tpu.memory_space<vmem>>, vector<8x8x128xf32>,
    %cst_75 = arith.constant 0.000000e+00 : f32
    %76 = vector.broadcast %cst_75 : f32 to vector<64x128xf32>
    %c0_76 = arith.constant 0 : index
    %c0_77 = arith.constant 0 : index
    %c0_78 = arith.constant 0 : index
    %77 = vector.load %arg12[%c0_76, %c0_77, %c0_78] : memref<10x10x128xf32, #tpu.memory_space<vmem>>, vector<8x8x128xf32>
    %78 = vector.shape_cast %77 : vector<8x8x128xf32> to vector<64x128xf32>
    %79 = arith.truncf %78 : vector<64x128xf32> to vector<64x128xbf16>
    %c0_79 = arith.constant 0 : index
    %c0_80 = arith.constant 0 : index
    %c0_81 = arith.constant 0 : index
    %80 = vector.load %arg5[%c0_79, %c0_80, %c0_81] : memref<9x128x128xbf16, #tpu.memory_space<vmem>>, vector<1x128x128xbf16>
    %81 = vector.shape_cast %80 : vector<1x128x128xbf16> to vector<128x128xbf16>
    %cst_82 = arith.constant dense<0.000000e+00> : vector<64x128xf32>
    %82 = tpu.matmul %79, %81, %cst_82 {dimension_numbers = #tpu.dot_dimension_numbers<[1], [0], [0], [1], [0, 0, 1, 1], [], []>} : vector<64x128xbf16>, vector<128x128xbf16>, vector<64x128xf32> -> vector<64x128xf32>
    %83 = arith.addf %76, %82 : vector<64x128xf32>
    %c0_83 = arith.constant 0 : index
    %c1_84 = arith.constant 1 : index
    %c0_85 = arith.constant 0 : index
    %84 = vector.load %arg12[%c0_83, %c1_84, %c0_85] : memref<10x10x128xf32, #tpu.memory_space<vmem>>, vector<8x8x128xf32>
    %85 = vector.shape_cast %84 : vector<8x8x128xf32> to vector<64x128xf32>
    %86 = arith.truncf %85 : vector<64x128xf32> to vector<64x128xbf16>
    %c1_86 = arith.constant 1 : index
    %c0_87 = arith.constant 0 : index
    %c0_88 = arith.constant 0 : index
    %87 = vector.load %arg5[%c1_86, %c0_87, %c0_88] : memref<9x128x128xbf16, #tpu.memory_space<vmem>>, vector<1x128x128xbf16>
    %88 = vector.shape_cast %87 : vector<1x128x128xbf16> to vector<128x128xbf16>
    %cst_89 = arith.constant dense<0.000000e+00> : vector<64x128xf32>
    %89 = tpu.matmul %86, %88, %cst_89 {dimension_numbers = #tpu.dot_dimension_numbers<[1], [0], [0], [1], [0, 0, 1, 1], [], []>} : vector<64x128xbf16>, vector<128x128xbf16>, vector<64x128xf32> -> vector<64x128xf32>
    %90 = arith.addf %83, %89 : vector<64x128xf32>
    %c0_90 = arith.constant 0 : index
    %c2_91 = arith.constant 2 : index
    %c0_92 = arith.constant 0 : index
    %91 = vector.load %arg12[%c0_90, %c2_91, %c0_92] : memref<10x10x128xf32, #tpu.memory_space<vmem>>, vector<8x8x128xf32>
    %92 = vector.shape_cast %91 : vector<8x8x128xf32> to vector<64x128xf32>
    %93 = arith.truncf %92 : vector<64x128xf32> to vector<64x128xbf16>
    %c2_93 = arith.constant 2 : index
    %c0_94 = arith.constant 0 : index
    %c0_95 = arith.constant 0 : index
    %94 = vector.load %arg5[%c2_93, %c0_94, %c0_95] : memref<9x128x128xbf16, #tpu.memory_space<vmem>>, vector<1x128x128xbf16>
    %95 = vector.shape_cast %94 : vector<1x128x128xbf16> to vector<128x128xbf16>
    %cst_96 = arith.constant dense<0.000000e+00> : vector<64x128xf32>
    %96 = tpu.matmul %93, %95, %cst_96 {dimension_numbers = #tpu.dot_dimension_numbers<[1], [0], [0], [1], [0, 0, 1, 1], [], []>} : vector<64x128xbf16>, vector<128x128xbf16>, vector<64x128xf32> -> vector<64x128xf32>
    %97 = arith.addf %90, %96 : vector<64x128xf32>
    %c1_97 = arith.constant 1 : index
    %c0_98 = arith.constant 0 : index
    %c0_99 = arith.constant 0 : index
    %98 = vector.load %arg12[%c1_97, %c0_98, %c0_99] : memref<10x10x128xf32, #tpu.memory_space<vmem>>, vector<8x8x128xf32>
    %99 = vector.shape_cast %98 : vector<8x8x128xf32> to vector<64x128xf32>
    %100 = arith.truncf %99 : vector<64x128xf32> to vector<64x128xbf16>
    %c3_100 = arith.constant 3 : index
    %c0_101 = arith.constant 0 : index
    %c0_102 = arith.constant 0 : index
    %101 = vector.load %arg5[%c3_100, %c0_101, %c0_102] : memref<9x128x128xbf16, #tpu.memory_space<vmem>>, vector<1x128x128xbf16>
    %102 = vector.shape_cast %101 : vector<1x128x128xbf16> to vector<128x128xbf16>
    %cst_103 = arith.constant dense<0.000000e+00> : vector<64x128xf32>
    %103 = tpu.matmul %100, %102, %cst_103 {dimension_numbers = #tpu.dot_dimension_numbers<[1], [0], [0], [1], [0, 0, 1, 1], [], []>} : vector<64x128xbf16>, vector<128x128xbf16>, vector<64x128xf32> -> vector<64x128xf32>
    %104 = arith.addf %97, %103 : vector<64x128xf32>
    %c1_104 = arith.constant 1 : index
    %c1_105 = arith.constant 1 : index
    %c0_106 = arith.constant 0 : index
    %105 = vector.load %arg12[%c1_104, %c1_105, %c0_106] : memref<10x10x128xf32, #tpu.memory_space<vmem>>, vector<8x8x128xf32>
    %106 = vector.shape_cast %105 : vector<8x8x128xf32> to vector<64x128xf32>
    %107 = arith.truncf %106 : vector<64x128xf32> to vector<64x128xbf16>
    %c4_107 = arith.constant 4 : index
    %c0_108 = arith.constant 0 : index
    %c0_109 = arith.constant 0 : index
    %108 = vector.load %arg5[%c4_107, %c0_108, %c0_109] : memref<9x128x128xbf16, #tpu.memory_space<vmem>>, vector<1x128x128xbf16>
    %109 = vector.shape_cast %108 : vector<1x128x128xbf16> to vector<128x128xbf16>
    %cst_110 = arith.constant dense<0.000000e+00> : vector<64x128xf32>
    %110 = tpu.matmul %107, %109, %cst_110 {dimension_numbers = #tpu.dot_dimension_numbers<[1], [0], [0], [1], [0, 0, 1, 1], [], []>} : vector<64x128xbf16>, vector<128x128xbf16>, vector<64x128xf32> -> vector<64x128xf32>
    %111 = arith.addf %104, %110 : vector<64x128xf32>
    %c1_111 = arith.constant 1 : index
    %c2_112 = arith.constant 2 : index
    %c0_113 = arith.constant 0 : index
    %112 = vector.load %arg12[%c1_111, %c2_112, %c0_113] : memref<10x10x128xf32, #tpu.memory_space<vmem>>, vector<8x8x128xf32>
    %113 = vector.shape_cast %112 : vector<8x8x128xf32> to vector<64x128xf32>
    %114 = arith.truncf %113 : vector<64x128xf32> to vector<64x128xbf16>
    %c5_114 = arith.constant 5 : index
    %c0_115 = arith.constant 0 : index
    %c0_116 = arith.constant 0 : index
    %115 = vector.load %arg5[%c5_114, %c0_115, %c0_116] : memref<9x128x128xbf16, #tpu.memory_space<vmem>>, vector<1x128x128xbf16>
    %116 = vector.shape_cast %115 : vector<1x128x128xbf16> to vector<128x128xbf16>
    %cst_117 = arith.constant dense<0.000000e+00> : vector<64x128xf32>
    %117 = tpu.matmul %114, %116, %cst_117 {dimension_numbers = #tpu.dot_dimension_numbers<[1], [0], [0], [1], [0, 0, 1, 1], [], []>} : vector<64x128xbf16>, vector<128x128xbf16>, vector<64x128xf32> -> vector<64x128xf32>
    %118 = arith.addf %111, %117 : vector<64x128xf32>
    %c2_118 = arith.constant 2 : index
    %c0_119 = arith.constant 0 : index
    %c0_120 = arith.constant 0 : index
    %119 = vector.load %arg12[%c2_118, %c0_119, %c0_120] : memref<10x10x128xf32, #tpu.memory_space<vmem>>, vector<8x8x128xf32>
    %120 = vector.shape_cast %119 : vector<8x8x128xf32> to vector<64x128xf32>
    %121 = arith.truncf %120 : vector<64x128xf32> to vector<64x128xbf16>
    %c6_121 = arith.constant 6 : index
    %c0_122 = arith.constant 0 : index
    %c0_123 = arith.constant 0 : index
    %122 = vector.load %arg5[%c6_121, %c0_122, %c0_123] : memref<9x128x128xbf16, #tpu.memory_space<vmem>>, vector<1x128x128xbf16>
    %123 = vector.shape_cast %122 : vector<1x128x128xbf16> to vector<128x128xbf16>
    %cst_124 = arith.constant dense<0.000000e+00> : vector<64x128xf32>
    %124 = tpu.matmul %121, %123, %cst_124 {dimension_numbers = #tpu.dot_dimension_numbers<[1], [0], [0], [1], [0, 0, 1, 1], [], []>} : vector<64x128xbf16>, vector<128x128xbf16>, vector<64x128xf32> -> vector<64x128xf32>
    %125 = arith.addf %118, %124 : vector<64x128xf32>
    %c2_125 = arith.constant 2 : index
    %c1_126 = arith.constant 1 : index
    %c0_127 = arith.constant 0 : index
    %126 = vector.load %arg12[%c2_125, %c1_126, %c0_127] : memref<10x10x128xf32, #tpu.memory_space<vmem>>, vector<8x8x128xf32>
    %127 = vector.shape_cast %126 : vector<8x8x128xf32> to vector<64x128xf32>
    %128 = arith.truncf %127 : vector<64x128xf32> to vector<64x128xbf16>
    %c7_128 = arith.constant 7 : index
    %c0_129 = arith.constant 0 : index
    %c0_130 = arith.constant 0 : index
    %129 = vector.load %arg5[%c7_128, %c0_129, %c0_130] : memref<9x128x128xbf16, #tpu.memory_space<vmem>>, vector<1x128x128xbf16>
    %130 = vector.shape_cast %129 : vector<1x128x128xbf16> to vector<128x128xbf16>
    %cst_131 = arith.constant dense<0.000000e+00> : vector<64x128xf32>
    %131 = tpu.matmul %128, %130, %cst_131 {dimension_numbers = #tpu.dot_dimension_numbers<[1], [0], [0], [1], [0, 0, 1, 1], [], []>} : vector<64x128xbf16>, vector<128x128xbf16>, vector<64x128xf32> -> vector<64x128xf32>
    %132 = arith.addf %125, %131 : vector<64x128xf32>
    %c2_132 = arith.constant 2 : index
    %c2_133 = arith.constant 2 : index
    %c0_134 = arith.constant 0 : index
    %133 = vector.load %arg12[%c2_132, %c2_133, %c0_134] : memref<10x10x128xf32, #tpu.memory_space<vmem>>, vector<8x8x128xf32>
    %134 = vector.shape_cast %133 : vector<8x8x128xf32> to vector<64x128xf32>
    %135 = arith.truncf %134 : vector<64x128xf32> to vector<64x128xbf16>
    %c8_135 = arith.constant 8 : index
    %c0_136 = arith.constant 0 : index
    %c0_137 = arith.constant 0 : index
    %136 = vector.load %arg5[%c8_135, %c0_136, %c0_137] : memref<9x128x128xbf16, #tpu.memory_space<vmem>>, vector<1x128x128xbf16>
    %137 = vector.shape_cast %136 : vector<1x128x128xbf16> to vector<128x128xbf16>
    %cst_138 = arith.constant dense<0.000000e+00> : vector<64x128xf32>
    %138 = tpu.matmul %135, %137, %cst_138 {dimension_numbers = #tpu.dot_dimension_numbers<[1], [0], [0], [1], [0, 0, 1, 1], [], []>} : vector<64x128xbf16>, vector<128x128xbf16>, vector<64x128xf32> -> vector<64x128xf32>
    %139 = arith.addf %132, %138 : vector<64x128xf32>
    %c0_139 = arith.constant 0 : index
    %c0_140 = arith.constant 0 : index
    %140 = vector.load %arg6[%c0_139, %c0_140] : memref<1x128xf32, #tpu.memory_space<vmem>>, vector<1x128xf32>
    %141 = vector.broadcast %140 : vector<1x128xf32> to vector<64x128xf32>
    %142 = arith.mulf %139, %141 : vector<64x128xf32>
    %c0_141 = arith.constant 0 : index
    %c0_142 = arith.constant 0 : index
    %143 = vector.load %arg7[%c0_141, %c0_142] : memref<1x128xf32, #tpu.memory_space<vmem>>, vector<1x128xf32>
    %144 = vector.broadcast %143 : vector<1x128xf32> to vector<64x128xf32>
    %145 = arith.addf %142, %144 : vector<64x128xf32>
    %c3_143 = arith.constant 3 : index
    %c0_144 = arith.constant 0 : index
    %c0_145 = arith.constant 0 : index
    %c0_146 = arith.constant 0 : index
    %146 = vector.load %arg1[%c3_143, %c0_144, %c0_145, %c0_146] : memref<4x9x9x128xbf16, #tpu.memory_space<vmem>>, vector<1x8x8x128xbf16>
    %147 = vector.shape_cast %146 : vector<1x8x8x128xbf16> to vector<8x8x128xbf16>
    %148 = vector.shape_cast %147 : vector<8x8x128xbf16> to vector<64x128xbf16>
    %c0_147 = arith.constant 0 : index
    %c0_148 = arith.constant 0 : index
    %149 = vector.load %arg8[%c0_147, %c0_148] : memref<128x128xbf16, #tpu.memory_space<vmem>>, vector<128x128xbf16>
    %cst_149 = arith.constant dense<0.000000e+00> : vector<64x128xf32>
    %150 = tpu.matmul %148, %149, %cst_149 {dimension_numbers = #tpu.dot_dimension_numbers<[1], [0], [0], [1], [0, 0, 1, 1], [], []>} : vector<64x128xbf16>, vector<128x128xbf16>, vector<64x128xf32> -> vector<64x128xf32>
    %c0_150 = arith.constant 0 : index
    %c0_151 = arith.constant 0 : index
    %151 = vector.load %arg9[%c0_150, %c0_151] : memref<1x128xf32, #tpu.memory_space<vmem>>, vector<1x128xf32>
    %152 = vector.broadcast %151 : vector<1x128xf32> to vector<64x128xf32>
    %153 = arith.mulf %150, %152 : vector<64x128xf32>
    %c0_152 = arith.constant 0 : index
    %c0_153 = arith.constant 0 : index
    %154 = vector.load %arg10[%c0_152, %c0_153] : memref<1x128xf32, #tpu.memory_space<vmem>>, vector<1x128xf32>
    %155 = vector.broadcast %154 : vector<1x128xf32> to vector<64x128xf32>
    %156 = arith.addf %153, %155 : vector<64x128xf32>
    %157 = arith.addf %145, %156 : vector<64x128xf32>
    %cst_154 = arith.constant 0.000000e+00 : f32
    %158 = vector.broadcast %cst_154 : f32 to vector<64x128xf32>
    %159 = arith.maximumf %157, %158 : vector<64x128xf32>
    %160 = vector.shape_cast %159 : vector<64x128xf32> to vector<8x8x128xf32>
    %c0_155 = arith.constant 0 : index
    %c0_156 = arith.constant 0 : index
    %c0_157 = arith.constant 0 : index
    %c0_158 = arith.constant 0 : index
    %161 = vector.load %arg11[%c0_155, %c0_156, %c0_157, %c0_158] : memref<1x8x8x128xf32, #tpu.memory_space<vmem>>, vector<1x8x8x128xf32>
    %162 = vector.shape_cast %161 : vector<1x8x8x128xf32> to vector<8x8x128xf32>
    %163 = vector.shape_cast %160 : vector<8x8x128xf32> to vector<1x8x8x128xf32>
    tpu.vector_store %arg11[%c0_155, %c0_156, %c0_157, %c0_158], %163 {strides = array<i32>} : memref<1x8x8x128xf32, #tpu.memory_space<vmem>>, vector<1x8x8x128xf32>,
    return
  }
  func.func @transform_0(%arg0: i32) -> (i32, i32, i32, i32) {
    %c0_i32 = arith.constant 0 : i32
    %c0_i32_0 = arith.constant 0 : i32
    %c0_i32_1 = arith.constant 0 : i32
    %c0_i32_2 = arith.constant 0 : i32
    return %arg0, %c0_i32, %c0_i32_0, %c0_i32_1 : i32, i32, i32, i32
  }
  func.func @transform_1(%arg0: i32) -> (i32, i32, i32) {
    %c0_i32 = arith.constant 0 : i32
    %c0_i32_0 = arith.constant 0 : i32
    %c0_i32_1 = arith.constant 0 : i32
    %c0_i32_2 = arith.constant 0 : i32
    return %c0_i32, %c0_i32_0, %c0_i32_1 : i32, i32, i32
  }
  func.func @transform_2(%arg0: i32) -> (i32, i32) {
    %c0_i32 = arith.constant 0 : i32
    %c0_i32_0 = arith.constant 0 : i32
    %c0_i32_1 = arith.constant 0 : i32
    return %c0_i32, %c0_i32_0 : i32, i32
  }
  func.func @transform_3(%arg0: i32) -> (i32, i32) {
    %c0_i32 = arith.constant 0 : i32
    %c0_i32_0 = arith.constant 0 : i32
    %c0_i32_1 = arith.constant 0 : i32
    return %c0_i32, %c0_i32_0 : i32, i32
  }
  func.func @transform_4(%arg0: i32) -> (i32, i32, i32) {
    %c0_i32 = arith.constant 0 : i32
    %c0_i32_0 = arith.constant 0 : i32
    %c0_i32_1 = arith.constant 0 : i32
    %c0_i32_2 = arith.constant 0 : i32
    return %c0_i32, %c0_i32_0, %c0_i32_1 : i32, i32, i32
  }
  func.func @transform_5(%arg0: i32) -> (i32, i32) {
    %c0_i32 = arith.constant 0 : i32
    %c0_i32_0 = arith.constant 0 : i32
    %c0_i32_1 = arith.constant 0 : i32
    return %c0_i32, %c0_i32_0 : i32, i32
  }
  func.func @transform_6(%arg0: i32) -> (i32, i32) {
    %c0_i32 = arith.constant 0 : i32
    %c0_i32_0 = arith.constant 0 : i32
    %c0_i32_1 = arith.constant 0 : i32
    return %c0_i32, %c0_i32_0 : i32, i32
  }
  func.func @transform_7(%arg0: i32) -> (i32, i32) {
    %c0_i32 = arith.constant 0 : i32
    %c0_i32_0 = arith.constant 0 : i32
    %c0_i32_1 = arith.constant 0 : i32
    return %c0_i32, %c0_i32_0 : i32, i32
  }
  func.func @transform_8(%arg0: i32) -> (i32, i32) {
    %c0_i32 = arith.constant 0 : i32
    %c0_i32_0 = arith.constant 0 : i32
    %c0_i32_1 = arith.constant 0 : i32
    return %c0_i32, %c0_i32_0 : i32, i32
  }
  func.func @transform_9(%arg0: i32) -> (i32, i32) {
    %c0_i32 = arith.constant 0 : i32
    %c0_i32_0 = arith.constant 0 : i32
    %c0_i32_1 = arith.constant 0 : i32
    return %c0_i32, %c0_i32_0 : i32, i32
  }
  func.func @transform_10(%arg0: i32) -> (i32, i32, i32, i32) {
    %c0_i32 = arith.constant 0 : i32
    %c0_i32_0 = arith.constant 0 : i32
    %c0_i32_1 = arith.constant 0 : i32
    %c0_i32_2 = arith.constant 0 : i32
    return %arg0, %c0_i32, %c0_i32_0, %c0_i32_1 : i32, i32, i32, i32
  }
}

</mosaic_0001>

<bundles_post_ra>
// kernel: basic_block_forward.1
= control target key start
LH: loop header
LB: loop body
LE: loop exit
PB: predicated region body
PF: predicated region fallthrough
CT: control target
= control target key end

     0   :  { %s5552_s13 = smov 0   ;;  %s6428_s0 = inlined_call_operand.vmem [shape: bf16[8,9,9,128], index: 0, kind: input, shape index: {}]   ;;  %s6429_s1 = inlined_call_operand.vmem [shape: bf16[9,128,128], index: 1, kind: input, shape index: {}]   ;;  %s6430_s2 = inlined_call_operand.vmem [shape: f32[1,128], index: 2, kind: input, shape index: {}]   ;;  %s6431_s3 = inlined_call_operand.vmem [shape: f32[1,128], index: 3, kind: input, shape index: {}]   ;;  %s6432_s4 = inlined_call_operand.vmem [shape: bf16[9,128,128], index: 4, kind: input, shape index: {}]   ;;  %s6433_s5 = inlined_call_operand.vmem [shape: f32[1,128], index: 5, kind: input, shape index: {}]   ;;  %s6434_s6 = inlined_call_operand.vmem [shape: f32[1,128], index: 6, kind: input, shape index: {}]   ;;  %s6435_s7 = inlined_call_operand.vmem [shape: bf16[128,128], index: 7, kind: input, shape index: {}]   ;;  %s6436_s8 = inlined_call_operand.vmem [shape: f32[1,128], index: 8, kind: input, shape index: {}]   ;;  %s6437_s9 = inlined_call_operand.vmem [shape: f32[1,128], index: 9, kind: input, shape index: {}]   ;;  %s6438_s10 = inlined_call_operand.vmem [shape: f32[2,8,8,128], index: 10, kind: output, shape index: {}]  }
   0x1 LB: > { %s5558_s14 = sadd.s32 4294967295, %s5494_s13   ;;  %p3928_p0 = scmp.ge.s32.totalorder %s5494_s13, 1  ;;  %s5494_s13 = sphi %s5552_s13, %s20_s13  }
   0x2   : > { %p314_p1 = scmp.lt.s32.totalorder %s5494_s13, 3 }
   0x4   : > { %p315_p2 = pnand %p3928_p0, %p314_p1 }
   0x5   : > { %v5308_v0 = vld [vmem:[%s6429_s1 + $0x40] sm:$0xff] (!%p315_p2)   ;;  %s3929_s17 = sshll.u32 (!%p315_p2), %s5558_s14, 2  ;;  %v5309_v1 = vld [vmem:[%s6429_s1 + $0x48] sm:$0xff] (!%p315_p2)   ;;  %v5310_v2 = vld [vmem:[%s6429_s1 + $0x50] sm:$0xff] (!%p315_p2)   ;;  %vm706_vm0 = vsmask.f32 (!%p315_p2), 3328 }
   0x6   : > { %318 = sbr.rel (%p315_p2) target bundleno = 1029 (0x405), region = 60  ;;  %p354_p3 = scmp.lt.s32.totalorder (!%p315_p2), %s3929_s17, 7  ;;  %4698 = vmatprep.subr.bf16.mxu0 (!%p315_p2), %v5308_v0  ;;  %v5311_v3 = vld [vmem:[%s6429_s1 + $0x58] sm:$0xff] (!%p315_p2)   ;;  %v5312_v5 = vld [vmem:[%s6429_s1 + $0x60] sm:$0xff] (!%p315_p2)   ;;  %v5313_v6 = vld [vmem:[%s6429_s1 + $0x68] sm:$0xff] (!%p315_p2)  }
   0x7   : > { %4699 = vmatpush3.bf16.msra.mxu0 (!%p315_p2), %v5308_v0  ;;  %v5314_v7 = vld [vmem:[%s6429_s1 + $0x70] sm:$0xff] (!%p315_p2)   ;;  %v5315_v8 = vld [vmem:[%s6429_s1 + $0x78] sm:$0xff] (!%p315_p2)   ;;  %v5317_v9 = vld [vmem:[%s6429_s1] sm:$0xff] (!%p315_p2)   ;;  %vm707_vm1 = vsmask.f32 (!%p315_p2), 7440  ;;  %p360_p4 = scmp.lt.s32.totalorder (!%p315_p2), %s5558_s14, 1 }
   0x8   : > { %4700 = vmatprep.subr.bf16.mxu0 (!%p315_p2), %v5309_v1  ;;  %v5319_v12 = vld [vmem:[%s6429_s1 + $0x8] sm:$0xff] (!%p315_p2)   ;;  %v5320_v13 = vld [vmem:[%s6429_s1 + $0x10] sm:$0xff] (!%p315_p2)   ;;  %v5321_v16 = vld [vmem:[%s6429_s1 + $0x18] sm:$0xff] (!%p315_p2)  }
   0x9   : > { %v5322_v17 = vld [vmem:[%s6429_s1 + $0x20] sm:$0xff] (!%p315_p2)   ;;  %v5323_v18 = vld [vmem:[%s6429_s1 + $0x28] sm:$0xff] (!%p315_p2)   ;;  %v5325_v23 = vld [vmem:[%s6429_s1 + $0x30] sm:$0xff] (!%p315_p2)  }
   0xa   : > { %v5327_v27 = vld [vmem:[%s6429_s1 + $0x38] sm:$0xff] (!%p315_p2)   ;;  %v5329_v33 = vld [vmem:[%s6429_s1 + $0x80] sm:$0xff] (!%p315_p2)   ;;  %v5331_v40 = vld [vmem:[%s6429_s1 + $0x88] sm:$0xff] (!%p315_p2)  }
   0xb   : > { %4701 = vmatpush3.bf16.msra.mxu0 (!%p315_p2), %v5309_v1  ;;  %vm5635_vm2 = vmor (!%p315_p2), %vm706_vm0, %vm707_vm1  ;;  %v5332_v50 = vld [vmem:[%s6429_s1 + $0x90] sm:$0xff] (!%p315_p2)   ;;  %v5333_v54 = vld [vmem:[%s6429_s1 + $0x98] sm:$0xff] (!%p315_p2)  }
   0xc   : > { %4702 = vmatprep.subr.bf16.mxu0 (!%p315_p2), %v5310_v2  ;;  %v5334_v0 = vld [vmem:[%s6429_s1 + $0xa0] sm:$0xff] (!%p315_p2)   ;;  %v5410_v46 = vld [vmem:[%s6432_s4 + $0x70] sm:$0xff] (!%p315_p2)  }
   0xd   : > { %s6442_s17 = smov (!%p354_p3, %s3929_s17), 7  ;;  %s6444_s14 = smov (!%p360_p4, %s5558_s14), 1 }
   0xe   : > { %s5298_s22 = smul.u32 72, %s6442_s17  ;;  %s4469_s29 = sshll.u32 %s6444_s14, 6 }
   0xf   : > { %4703 = vmatpush3.bf16.msra.mxu0 %v5310_v2  ;;  %s6415_s12 = scalar_lea.vmem %s6438_s10, %s4469_s29 }
  0x10   : > { %s5578_s27 = scalar_lea.vmem %s6428_s0, %s5298_s22  ;;  %4704 = vmatprep.subr.bf16.mxu0 %v5311_v3 }
  0x11   : > { %v5316_v4 = vld [vmem:[%s5578_s27 + $0x48] ss:$8 sps:$4 sm:$0xff]   ;;  %v5318_v10 = vld [vmem:[%s5578_s27 + $0x58] ss:$8 sps:$4 sm:$0xff]   ;;  %v691_v26 = vld [vmem:[%s5578_s27 + $0x4] sm:$0x1] }
  0x12   : > { %4714 = vmatprep.mubr.bf16.mxu0 %v5316_v4  ;;  %v5324_v11 = vld [vmem:[%s5578_s27 + $0x68] ss:$8 sps:$4 sm:$0xff]   ;;  %v5326_v14 = vld [vmem:[%s5578_s27 + $0x78] ss:$8 sps:$4 sm:$0xff]   ;;  %v693_v28 = vld [vmem:[%s5578_s27 + $0xc] sm:$0x1] }
  0x13   : > { %4705 = vmatpush3.bf16.msra.mxu0 %v5311_v3  ;;  %v5328_v15 = vld [vmem:[%s5578_s27] ss:$8 sps:$4 sm:$0xff]   ;;  %v719_v34 = vshll.u32 %v691_v26, 16  ;;  %v733_v35 = vshll.u32 %v693_v28, 16  ;;  %v5330_v36 = vld [vmem:[%s5578_s27 + $0x10] ss:$8 sps:$4 sm:$0xff]  }
  0x14   : > { %4706 = vmatprep.subr.bf16.mxu0 %v5312_v5  ;;  %v690_v19 = vld [vmem:[%s5578_s27] sm:$0xf]  ;;  %v692_v20 = vld [vmem:[%s5578_s27 + $0x8] sm:$0xf]  ;;  %v694_v41 = vld [vmem:[%s5578_s27 + $0x10] sm:$0xf] }
  0x15   : > { %v710_v21 = vshrl.u32 %v690_v19, 16  ;;  %v713_v22 = vshll.u32 %v690_v19, 16  ;;  %v724_v24 = vshrl.u32 %v692_v20, 16  ;;  %v727_v25 = vshll.u32 %v692_v20, 16  ;;  %v5336_v39 = vld [vmem:[%s5578_s27 + $0x20] ss:$8 sps:$4 sm:$0xff]  }
  0x16   : > { %v721_v42 = vrot.slane %v719_v34, 5  ;;  %v735_v43 = vrot.slane %v733_v35, 5  ;;  %v696_v47 = vld [vmem:[%s5578_s27 + $0x18] sm:$0xf]  ;;  %v738_v48 = vshrl.u32 %v694_v41, 16  ;;  %v741_v49 = vshll.u32 %v694_v41, 16 }
  0x17   : > { %4707 = vmatpush3.bf16.msra.mxu0 %v5312_v5  ;;  %v712_v29 = vrot.slane %v710_v21, 4  ;;  %v715_v30 = vrot.slane %v713_v22, 5  ;;  %v726_v31 = vrot.slane %v724_v24, 4  ;;  %v729_v32 = vrot.slane %v727_v25, 5  ;;  %v5338_v53 = vld [vmem:[%s5578_s27 + $0x30] ss:$8 sps:$4 sm:$0xff]  }
  0x18   : > { %4708 = vmatprep.subr.bf16.mxu0 %v5313_v6  ;;  %v752_v55 = vshrl.u32 %v696_v47, 16  ;;  %v755_v56 = vshll.u32 %v696_v47, 16  ;;  %v740_v58 = vrot.slane %v738_v48, 4  ;;  %v743_v59 = vrot.slane %v741_v49, 5  ;;  %v698_v60 = vld [vmem:[%s5578_s27 + $0x20] sm:$0xf] }
  0x19   : > { %v716_v37 = vor.u32 %v715_v30, %v712_v29  ;;  %v730_v38 = vor.u32 %v729_v32, %v726_v31  ;;  %v695_v61 = vld [vmem:[%s5578_s27 + $0x14] sm:$0x1]  ;;  %v697_v62 = vld [vmem:[%s5578_s27 + $0x1c] sm:$0x1]  ;;  %v700_v63 = vld [vmem:[%s5578_s27 + $0x28] sm:$0xf] }
  0x1a   : > { %v754_v1 = vrot.slane %v752_v55, 4  ;;  %v757_v2 = vrot.slane %v755_v56, 5  ;;  %v766_v3 = vshrl.u32 %v698_v60, 16  ;;  %v769_v4 = vshll.u32 %v698_v60, 16  ;;  %v5337_v28 = vld [vmem:[%s6429_s1 + $0xb0] sm:$0xff]   ;;  %v5341_v60 = vld [vmem:[%s6429_s1 + $0xc8] sm:$0xff]  }
  0x1b   : > { %4709 = vmatpush3.bf16.msra.mxu0 %v5313_v6  ;;  %v717_v44 = vrot.slane %v716_v37, 4  ;;  %v731_v45 = vrot.slane %v730_v38, 4  ;;  %v780_v5 = vshrl.u32 %v700_v63, 16  ;;  %v783_v6 = vshll.u32 %v700_v63, 16  ;;  %v703_v35 = vld [vmem:[%s5578_s27 + $0x34] sm:$0x1] }
  0x1c   : > { %4710 = vmatprep.subr.bf16.mxu0 %v5314_v7  ;;  %v705_v37 = vld [vmem:[%s5578_s27 + $0x3c] sm:$0x1] }
  0x1d   : > { %v722_v51 = vsel %vm5635_vm2, %v717_v44, %v721_v42  ;;  %v736_v52 = vsel %vm5635_vm2, %v731_v45, %v735_v43  ;;  %v785_v19 = vrot.slane %v783_v6, 5  ;;  %v803_v45 = vshll.u32 %v703_v35, 16  ;;  %v5347_v6 = vld [vmem:[%s6429_s1 + $0xf8] sm:$0xff]   ;;  %v5361_v35 = vld [vmem:[%s6429_s1 + $0x140] sm:$0xff]  }
  0x1e   : > { %v3997_v57 = vcombine.low %v722_v51, %v736_v52  ;;  %v5340_v51 = vld [vmem:[%s6429_s1 + $0xc0] sm:$0xff]  }
  0x1f   : > { %4711 = vmatpush3.bf16.msra.mxu0 %v5314_v7  ;;  %v5335_v7 = vld [vmem:[%s6429_s1 + $0xa8] sm:$0xff]   ;;  %v805_v55 = vrot.slane %v803_v45, 5 }
  0x20   : > { %4712 = vmatprep.subr.bf16.mxu0 %v5315_v8 }
  0x23   : > { %4713 = vmatpush3.bf16.msra.mxu0 %v5315_v8  ;;  %v747_v8 = vshll.u32 %v695_v61, 16  ;;  %v5342_v61 = vld [vmem:[%s6429_s1 + $0xd0] sm:$0xff]  }
  0x24   : > { %4722 = vmatprep.subr.bf16.mxu0 %v5317_v9 }
  0x25   : > { %v749_v26 = vrot.slane %v747_v8, 5  ;;  %v5350_v8 = vld [vmem:[%s5578_s27 + $0xa0] ss:$8 sps:$4 sm:$0xff]  }
  0x26   : > { %4715 = vmatmul.mubr.bf16.vlgmr.msra.gmra.mrb[0].mxu0 %v5318_v10  ;;  %v699_v10 = vld [vmem:[%s5578_s27 + $0x24] sm:$0x1] }
  0x27   : > { %4723 = vmatpush3.bf16.msra.mxu0 %v5317_v9  ;;  %4718 = vmatprep.mubr.bf16.mxu0 %v5324_v11  ;;  %v761_v9 = vshll.u32 %v697_v62, 16  ;;  %v701_v11 = vld [vmem:[%s5578_s27 + $0x2c] sm:$0x1]  ;;  %v775_v20 = vshll.u32 %v699_v10, 16 }
  0x28   : > { %4724 = vmatprep.subr.bf16.mxu0 %v5319_v12  ;;  %v789_v21 = vshll.u32 %v701_v11, 16  ;;  %v5351_v10 = vld [vmem:[%s6429_s1 + $0x108] sm:$0xff]   ;;  %v5352_v11 = vld [vmem:[%s6429_s1 + $0x110] sm:$0xff]  }
  0x2a   : > { %v791_v34 = vrot.slane %v789_v21, 5  ;;  %v4082_v21 = vld [vmem:[%s5578_s27 + $0x94] sm:$0x1] }
  0x2b   : > { %4725 = vmatpush3.bf16.msra.mxu0 %v5319_v12  ;;  %v744_v12 = vor.u32 %v743_v59, %v740_v58 }
  0x2c   : > { %4726 = vmatprep.subr.bf16.mxu0 %v5320_v13 }
  0x2d   : > { %v745_v29 = vrot.slane %v744_v12, 4  ;;  %v5358_v12 = vld [vmem:[%s5578_s27 + $0xc0] ss:$8 sps:$4 sm:$0xff]  }
  0x2e   : > { %4719 = vmatmul.mubr.bf16.gmra.mrb[4].mxu0 %v5326_v14  ;;  %v702_v14 = vld [vmem:[%s5578_s27 + $0x30] sm:$0xf] }
  0x2f   : > { %4727 = vmatpush3.bf16.msra.mxu0 %v5320_v13  ;;  %4738 = vmatprep.mubr.bf16.mxu0 %v5328_v15  ;;  %v758_v13 = vor.u32 %v757_v2, %v754_v1  ;;  %v704_v15 = vld [vmem:[%s5578_s27 + $0x38] sm:$0xf]  ;;  %v794_v22 = vshrl.u32 %v702_v14, 16  ;;  %v750_v44 = vsel %vm5635_vm2, %v745_v29, %v749_v26 }
  0x30   : > { %4728 = vmatprep.subr.bf16.mxu0 %v5321_v16  ;;  %v808_v24 = vshrl.u32 %v704_v15, 16  ;;  %v811_v25 = vshll.u32 %v704_v15, 16  ;;  %v5348_v2 = vld [vmem:[%s5578_s27 + $0x90] ss:$8 sps:$4 sm:$0xff]   ;;  %v5354_v15 = vld [vmem:[%s6429_s1 + $0x120] sm:$0xff]  }
  0x31   : > { %v759_v30 = vrot.slane %v758_v13, 4  ;;  %v796_v38 = vrot.slane %v794_v22, 4  ;;  %v5353_v13 = vld [vmem:[%s6429_s1 + $0x118] sm:$0xff]  }
  0x32   : > { %v813_v41 = vrot.slane %v811_v25, 5  ;;  %v4084_v22 = vld [vmem:[%s5578_s27 + $0x9c] sm:$0x1] }
  0x33   : > { %4729 = vmatpush3.bf16.msra.mxu0 %v5321_v16  ;;  %v768_v16 = vrot.slane %v766_v3, 4  ;;  %v5344_v3 = vld [vmem:[%s6429_s1 + $0xe0] sm:$0xff]   ;;  %v1357_v29 = vshll.u32 %v4084_v22, 16 }
  0x34   : > { %4730 = vmatprep.subr.bf16.mxu0 %v5322_v17 }
  0x37   : > { %4731 = vmatpush3.bf16.msra.mxu0 %v5322_v17  ;;  %v771_v17 = vrot.slane %v769_v4, 5  ;;  %v5345_v4 = vld [vmem:[%s6429_s1 + $0xe8] sm:$0xff]  }
  0x38   : > { %4732 = vmatprep.subr.bf16.mxu0 %v5323_v18 }
  0x39   : > { %v772_v31 = vor.u32 %v771_v17, %v768_v16  ;;  %v4081_v16 = vld [vmem:[%s5578_s27 + $0x90] sm:$0xf]  ;;  %v5355_v17 = vld [vmem:[%s6429_s1 + $0x128] sm:$0xff]  }
  0x3b   : > { %4733 = vmatpush3.bf16.msra.mxu0 %v5323_v18  ;;  %v782_v18 = vrot.slane %v780_v5, 4  ;;  %v773_v42 = vrot.slane %v772_v31, 4  ;;  %v5346_v5 = vld [vmem:[%s6429_s1 + $0xf0] sm:$0xff]  }
  0x3c   : > { %4734 = vmatprep.subr.bf16.mxu0 %v5325_v23 }
  0x3d   : > { %v786_v32 = vor.u32 %v785_v19, %v782_v18  ;;  %v4083_v18 = vld [vmem:[%s5578_s27 + $0x98] sm:$0xf]  ;;  %v1334_v19 = vshrl.u32 %v4081_v16, 16 }
  0x3e   : > { %v1351_v25 = vshll.u32 %v4083_v18, 16 }
  0x3f   : > { %4735 = vmatpush3.bf16.msra.mxu0 %v5325_v23  ;;  %v797_v23 = vshll.u32 %v702_v14, 16  ;;  %v787_v43 = vrot.slane %v786_v32, 4  ;;  %v5360_v14 = vld [vmem:[%s5578_s27 + $0xd8] ss:$8 sps:$4 sm:$0xff]   ;;  %v1336_v26 = vrot.slane %v1334_v19, 4 }
  0x40   : > { %4736 = vmatprep.subr.bf16.mxu0 %v5327_v27  ;;  %v1353_v31 = vrot.slane %v1351_v25, 5  ;;  %v5359_v32 = vld [vmem:[%s6429_s1 + $0x138] sm:$0xff]  }
  0x43   : > { %4737 = vmatpush3.bf16.msra.mxu0 %v5327_v27  ;;  %v763_v27 = vrot.slane %v761_v9, 5  ;;  %v5356_v9 = vld [vmem:[%s5578_s27 + $0xb0] ss:$8 sps:$4 sm:$0xff]  }
  0x44   : > { %4746 = vmatprep.subr.bf16.mxu0 %v5329_v33 }
  0x45   : > { %v764_v47 = vsel %vm5635_vm2, %v759_v30, %v763_v27 }
  0x46   : > { %4739 = vmatmul.mubr.bf16.vlgmr.msra.gmra.mrb[0].mxu0 %v5330_v36  ;;  %v5339_v36 = vld [vmem:[%s6429_s1 + $0xb8] sm:$0xff]  }
  0x47   : > { %4747 = vmatpush3.bf16.msra.mxu0 %v5329_v33  ;;  %4742 = vmatprep.mubr.bf16.mxu0 %v5336_v39  ;;  %v777_v33 = vrot.slane %v775_v20, 5  ;;  %v799_v39 = vrot.slane %v797_v23, 5  ;;  %v1337_v20 = vshll.u32 %v4081_v16, 16  ;;  %v5357_v23 = vld [vmem:[%s6429_s1 + $0x130] sm:$0xff]  }
  0x48   : > { %4748 = vmatprep.subr.bf16.mxu0 %v5331_v40 }
  0x49   : > { %v800_v48 = vor.u32 %v799_v39, %v796_v38  ;;  %v778_v52 = vsel %vm5635_vm2, %v773_v42, %v777_v33  ;;  %v1339_v27 = vrot.slane %v1337_v20, 5  ;;  %v5751_v38 = vld [vmem:[%s5578_s27 + $0xa4] sm:$0x1]  ;;  %v4087_v39 = vld [vmem:[%s5578_s27 + $0xa8] sm:$0xf] }
  0x4a   : > { %v4089_v42 = vld [vmem:[%s5578_s27 + $0xb0] sm:$0xf] }
  0x4b   : > { %4749 = vmatpush3.bf16.msra.mxu0 %v5331_v40  ;;  %v810_v40 = vrot.slane %v808_v24, 4  ;;  %v1348_v24 = vshrl.u32 %v4083_v18, 16  ;;  %v1340_v33 = vor.u32 %v1339_v27, %v1336_v26 }
  0x4c   : > { %4750 = vmatprep.subr.bf16.mxu0 %v5332_v50 }
  0x4d   : > { %v814_v49 = vor.u32 %v813_v41, %v810_v40  ;;  %v1350_v30 = vrot.slane %v1348_v24, 4  ;;  %v5755_v41 = vld [vmem:[%s5578_s27 + $0xac] sm:$0x1]  ;;  %v5370_v24 = vld [vmem:[%s5578_s27 + $0x108] ss:$8 sps:$4 sm:$0xff]  }
  0x4e   : > { %4743 = vmatmul.mubr.bf16.gmra.mrb[4].mxu0 %v5338_v53  ;;  %v792_v53 = vsel %vm5635_vm2, %v787_v43, %v791_v34  ;;  %v4085_v34 = vld [vmem:[%s5578_s27 + $0xa0] sm:$0xf]  ;;  %v4091_v43 = vld [vmem:[%s5578_s27 + $0xb8] sm:$0xf] }
  0x4f   : > { %4751 = vmatpush3.bf16.msra.mxu0 %v5332_v50  ;;  %4762 = vmatprep.mubr.bf16.mxu0 %v3997_v57  ;;  %v817_v50 = vshll.u32 %v705_v37, 16  ;;  %v3999_v56 = vcombine.low %v778_v52, %v792_v53  ;;  %v801_v57 = vrot.slane %v800_v48, 4  ;;  %v815_v58 = vrot.slane %v814_v49, 4  ;;  %v4093_v48 = vld [vmem:[%s5578_s27 + $0xc0] sm:$0xf] }
  0x50   : > { %4752 = vmatprep.subr.bf16.mxu0 %v5333_v54  ;;  %v5748_v37 = vrot.slane %v1357_v29, 5  ;;  %v1354_v40 = vor.u32 %v1353_v31, %v1350_v30  ;;  %v1362_v45 = vshrl.u32 %v4085_v34, 16  ;;  %v1341_v49 = vrot.slane %v1340_v33, 4  ;;  %v4095_v53 = vld [vmem:[%s5578_s27 + $0xc8] sm:$0xf] }
  0x51   : > { %v819_v59 = vrot.slane %v817_v50, 5  ;;  %v806_v62 = vsel %vm5635_vm2, %v801_v57, %v805_v55  ;;  %v1371_v50 = vshll.u32 %v5751_v38, 16  ;;  %v1379_v52 = vshll.u32 %v4087_v39, 16  ;;  %v5368_v55 = vld [vmem:[%s5578_s27 + $0xf8] ss:$8 sps:$4 sm:$0xff]  }
  0x52   : > { %v1393_v57 = vshll.u32 %v4089_v42, 16 }
  0x53   : > { %4753 = vmatpush3.bf16.msra.mxu0 %v5333_v54  ;;  %v3998_v54 = vcombine.low %v750_v44, %v764_v47  ;;  %v820_v63 = vsel %vm5635_vm2, %v815_v58, %v819_v59  ;;  %v5362_v44 = vld [vmem:[%s5578_s27 + $0xe8] ss:$8 sps:$4 sm:$0xff]   ;;  %v1365_v47 = vshll.u32 %v4085_v34, 16  ;;  %v1404_v58 = vshrl.u32 %v4091_v43, 16 }
  0x54   : > { %4754 = vmatprep.subr.bf16.mxu0 %v5334_v0  ;;  %v4000_v1 = vcombine.low %v806_v62, %v820_v63  ;;  %v1407_v59 = vshll.u32 %v4091_v43, 16  ;;  %v1418_v62 = vshrl.u32 %v4093_v48, 16  ;;  %v1421_v63 = vshll.u32 %v4093_v48, 16 }
  0x55   : > { %v1373_v34 = vrot.slane %v1371_v50, 5  ;;  %v5406_v50 = vld [vmem:[%s6432_s4 + $0x50] sm:$0xff]  }
  0x56   : > { %v1420_v16 = vrot.slane %v1418_v62, 4 }
  0x57   : > { %4755 = vmatpush3.bf16.msra.mxu0 %v5334_v0  ;;  %v5343_v0 = vld [vmem:[%s6429_s1 + $0xd8] sm:$0xff]  }
  0x58   : > { %4756 = vmatprep.subr.bf16.mxu0 %v5335_v7 }
  0x5b   : > { %4757 = vmatpush3.bf16.msra.mxu0 %v5335_v7  ;;  %v5349_v7 = vld [vmem:[%s6429_s1 + $0x100] sm:$0xff]  }
  0x5c   : > { %4758 = vmatprep.subr.bf16.mxu0 %v5337_v28 }
  0x5f   : > { %4759 = vmatpush3.bf16.msra.mxu0 %v5337_v28  ;;  %v1343_v28 = vshll.u32 %v4082_v21, 16 }
  0x60   : > { %4760 = vmatprep.subr.bf16.mxu0 %v5339_v36 }
  0x63   : > { %4761 = vmatpush3.bf16.msra.mxu0 %v5339_v36  ;;  %v5746_v36 = vrot.slane %v1343_v28, 5 }
  0x64   : > { %4770 = vmatprep.subr.bf16.mxu0 %v5340_v51 }
  0x66   : > { %4763 = vmatmul.mubr.bf16.vlgmr.msra.gmra.mrb[0].mxu0 %v3998_v54  ;;  %v5363_v54 = vld [vmem:[%s6429_s1 + $0x148] sm:$0xff]  }
  0x67   : > { %4771 = vmatpush3.bf16.msra.mxu0 %v5340_v51  ;;  %4766 = vmatprep.mubr.bf16.mxu0 %v3999_v56  ;;  %v1376_v51 = vshrl.u32 %v4087_v39, 16  ;;  %v1390_v56 = vshrl.u32 %v4089_v42, 16  ;;  %v5366_v39 = vld [vmem:[%s6429_s1 + $0x160] sm:$0xff]  }
  0x68   : > { %4772 = vmatprep.subr.bf16.mxu0 %v5341_v60 }
  0x6b   : > { %4773 = vmatpush3.bf16.msra.mxu0 %v5341_v60  ;;  %v1355_v60 = vrot.slane %v1354_v40, 4 }
  0x6c   : > { %4774 = vmatprep.subr.bf16.mxu0 %v5342_v61 }
  0x6d   : > { %v1360_v18 = vsel %vm5635_vm2, %v1355_v60, %v5748_v37 }
  0x6e   : > { %4767 = vmatmul.mubr.bf16.gmra.mrb[4].mxu0 %v4000_v1  ;;  %v1367_v1 = vrot.slane %v1365_v47, 5 }
  0x6f   : > { %4775 = vmatpush3.bf16.msra.mxu0 %v5342_v61  ;;  %4786 = vmatprep.mubr.bf16.mxu0 %v5348_v2  ;;  %v1385_v61 = vshll.u32 %v5755_v41, 16  ;;  %v1432_v2 = vshrl.u32 %v4095_v53, 16 }
  0x70   : > { %4776 = vmatprep.subr.bf16.mxu0 %v5343_v0 }
  0x71   : > { %v1434_v20 = vrot.slane %v1432_v2, 4 }
  0x73   : > { %4777 = vmatpush3.bf16.msra.mxu0 %v5343_v0  ;;  %v1364_v0 = vrot.slane %v1362_v45, 4  ;;  %v5405_v45 = vld [vmem:[%s6432_s4 + $0x48] sm:$0xff]  }
  0x74   : > { %4778 = vmatprep.subr.bf16.mxu0 %v5344_v3 }
  0x75   : > { %v1368_v19 = vor.u32 %v1367_v1, %v1364_v0  ;;  %v5374_v1 = vld [vmem:[%s6429_s1 + $0x190] sm:$0xff]  }
  0x77   : > { %4779 = vmatpush3.bf16.msra.mxu0 %v5344_v3  ;;  %v1435_v3 = vshll.u32 %v4095_v53, 16  ;;  %v1369_v33 = vrot.slane %v1368_v19, 4  ;;  %v5369_v53 = vld [vmem:[%s6429_s1 + $0x170] sm:$0xff]   ;;  %v4197_v19 = vld [vmem:[%s5578_s27 + $0x8] sm:$0xf] }
  0x78   : > { %4780 = vmatprep.subr.bf16.mxu0 %v5345_v4 }
  0x79   : > { %v1437_v21 = vrot.slane %v1435_v3, 5  ;;  %v5380_v3 = vld [vmem:[%s5578_s27 + $0x8] ss:$8 sps:$4 sm:$0xff]  }
  0x7b   : > { %4781 = vmatpush3.bf16.msra.mxu0 %v5345_v4  ;;  %v1378_v4 = vrot.slane %v1376_v51, 4  ;;  %v5367_v51 = vld [vmem:[%s6429_s1 + $0x168] sm:$0xff]  }
  0x7c   : > { %4782 = vmatprep.subr.bf16.mxu0 %v5346_v5 }
  0x7f   : > { %4783 = vmatpush3.bf16.msra.mxu0 %v5346_v5  ;;  %v1381_v5 = vrot.slane %v1379_v52, 5  ;;  %v5407_v52 = vld [vmem:[%s6432_s4 + $0x58] sm:$0xff]  }
  0x80   : > { %4784 = vmatprep.subr.bf16.mxu0 %v5347_v6 }
  0x81   : > { %v1382_v22 = vor.u32 %v1381_v5, %v1378_v4  ;;  %v5375_v4 = vld [vmem:[%s6429_s1 + $0x198] sm:$0xff]   ;;  %v5376_v5 = vld [vmem:[%s6429_s1 + $0x1a0] sm:$0xff]  }
  0x83   : > { %4785 = vmatpush3.bf16.msra.mxu0 %v5347_v6  ;;  %v4090_v6 = vld [vmem:[%s5578_s27 + $0xb4] sm:$0x1]  ;;  %v1383_v37 = vrot.slane %v1382_v22, 4  ;;  %v1958_v22 = vshrl.u32 %v4197_v19, 16 }
  0x84   : > { %4794 = vmatprep.subr.bf16.mxu0 %v5349_v7 }
  0x86   : > { %4787 = vmatmul.mubr.bf16.vlgmr.msra.gmra.mrb[0].mxu0 %v5350_v8  ;;  %v5364_v8 = vld [vmem:[%s6429_s1 + $0x150] sm:$0xff]  }
  0x87   : > { %4795 = vmatpush3.bf16.msra.mxu0 %v5349_v7  ;;  %4790 = vmatprep.mubr.bf16.mxu0 %v5356_v9  ;;  %v4092_v7 = vld [vmem:[%s5578_s27 + $0xbc] sm:$0x1]  ;;  %v1392_v9 = vrot.slane %v1390_v56, 4  ;;  %v1374_v56 = vsel %vm5635_vm2, %v1369_v33, %v1373_v34  ;;  %v5393_v33 = vld [vmem:[%s6429_s1 + $0x200] sm:$0xff]  }
  0x88   : > { %4796 = vmatprep.subr.bf16.mxu0 %v5351_v10  ;;  %v1413_v27 = vshll.u32 %v4092_v7, 16  ;;  %v5378_v7 = vld [vmem:[%s6429_s1 + $0x1b0] sm:$0xff]  }
  0x8a   : > { %v1415_v42 = vrot.slane %v1413_v27, 5  ;;  %v1960_v27 = vrot.slane %v1958_v22, 4 }
  0x8b   : > { %4797 = vmatpush3.bf16.msra.mxu0 %v5351_v10  ;;  %v1395_v10 = vrot.slane %v1393_v57, 5 }
  0x8c   : > { %4798 = vmatprep.subr.bf16.mxu0 %v5352_v11 }
  0x8d   : > { %v1396_v25 = vor.u32 %v1395_v10, %v1392_v9  ;;  %v5381_v9 = vld [vmem:[%s6429_s1 + $0x1c0] sm:$0xff]  }
  0x8e   : > { %4791 = vmatmul.mubr.bf16.gmra.mrb[4].mxu0 %v5358_v12  ;;  %v1409_v12 = vrot.slane %v1407_v59, 5  ;;  %v5382_v10 = vld [vmem:[%s5578_s27 + $0x18] ss:$8 sps:$4 sm:$0xff]  }
  0x8f   : > { %4799 = vmatpush3.bf16.msra.mxu0 %v5352_v11  ;;  %4810 = vmatprep.mubr.bf16.mxu0 %v5360_v14  ;;  %v1406_v11 = vrot.slane %v1404_v58, 4  ;;  %v1346_v14 = vsel %vm5635_vm2, %v1341_v49, %v5746_v36  ;;  %v1438_v36 = vor.u32 %v1437_v21, %v1434_v20  ;;  %v1397_v40 = vrot.slane %v1396_v25, 4  ;;  %v4199_v20 = vld [vmem:[%s5578_s27 + $0x10] sm:$0xf] }
  0x90   : > { %4800 = vmatprep.subr.bf16.mxu0 %v5353_v13  ;;  %v4113_v29 = vcombine.low %v1346_v14, %v1360_v18  ;;  %v5390_v14 = vld [vmem:[%s5578_s27 + $0x38] ss:$8 sps:$4 sm:$0xff]   ;;  %v5387_v18 = vld [vmem:[%s6429_s1 + $0x1e8] sm:$0xff]   ;;  %v5389_v21 = vld [vmem:[%s6429_s1 + $0x1f0] sm:$0xff]   ;;  %v1975_v25 = vshll.u32 %v4199_v20, 16 }
  0x91   : > { %v1410_v26 = vor.u32 %v1409_v12, %v1406_v11  ;;  %v1439_v49 = vrot.slane %v1438_v36, 4  ;;  %v5388_v11 = vld [vmem:[%s5578_s27 + $0x28] ss:$8 sps:$4 sm:$0xff]  }
  0x92   : > { %v5383_v12 = vld [vmem:[%s6429_s1 + $0x1c8] sm:$0xff]  }
  0x93   : > { %4801 = vmatpush3.bf16.msra.mxu0 %v5353_v13  ;;  %v4094_v13 = vld [vmem:[%s5578_s27 + $0xc4] sm:$0x1]  ;;  %v1411_v41 = vrot.slane %v1410_v26, 4  ;;  %v5391_v26 = vld [vmem:[%s6429_s1 + $0x1f8] sm:$0xff]  }
  0x94   : > { %4802 = vmatprep.subr.bf16.mxu0 %v5354_v15  ;;  %v1427_v28 = vshll.u32 %v4094_v13, 16  ;;  %v5384_v13 = vld [vmem:[%s6429_s1 + $0x1d0] sm:$0xff]  }
  0x95   : > { %v1416_v59 = vsel %vm5635_vm2, %v1411_v41, %v1415_v42 }
  0x96   : > { %v1429_v43 = vrot.slane %v1427_v28, 5 }
  0x97   : > { %4803 = vmatpush3.bf16.msra.mxu0 %v5354_v15  ;;  %v4096_v15 = vld [vmem:[%s5578_s27 + $0xcc] sm:$0x1] }
  0x98   : > { %4804 = vmatprep.subr.bf16.mxu0 %v5355_v17  ;;  %v1441_v31 = vshll.u32 %v4096_v15, 16  ;;  %v5392_v15 = vld [vmem:[%s5578_s27 + $0x50] ss:$8 sps:$4 sm:$0xff]  }
  0x9a   : > { %v1443_v48 = vrot.slane %v1441_v31, 5  ;;  %v4198_v31 = vld [vmem:[%s5578_s27 + $0xc] sm:$0x1] }
  0x9b   : > { %4805 = vmatpush3.bf16.msra.mxu0 %v5355_v17  ;;  %v1423_v17 = vrot.slane %v1421_v63, 5 }
  0x9c   : > { %4806 = vmatprep.subr.bf16.mxu0 %v5357_v23  ;;  %v1444_v0 = vsel %vm5635_vm2, %v1439_v49, %v1443_v48  ;;  %v5401_v49 = vld [vmem:[%s5578_s27 + $0x80] ss:$8 sps:$4 sm:$0xff]  }
  0x9d   : > { %v1424_v30 = vor.u32 %v1423_v17, %v1420_v16  ;;  %v5385_v16 = vld [vmem:[%s6429_s1 + $0x1d8] sm:$0xff]   ;;  %v5386_v17 = vld [vmem:[%s6429_s1 + $0x1e0] sm:$0xff]  }
  0x9f   : > { %4807 = vmatpush3.bf16.msra.mxu0 %v5357_v23  ;;  %v1399_v23 = vshll.u32 %v4090_v6, 16  ;;  %v1425_v47 = vrot.slane %v1424_v30, 4  ;;  %v5377_v6 = vld [vmem:[%s6429_s1 + $0x1a8] sm:$0xff]   ;;  %v1977_v30 = vrot.slane %v1975_v25, 5 }
  0xa0   : > { %4808 = vmatprep.subr.bf16.mxu0 %v5359_v32 }
  0xa1   : > { %v1401_v38 = vrot.slane %v1399_v23, 5  ;;  %v1430_v63 = vsel %vm5635_vm2, %v1425_v47, %v1429_v43  ;;  %v1961_v23 = vshll.u32 %v4197_v19, 16 }
  0xa2   : > { %v4116_v2 = vcombine.low %v1430_v63, %v1444_v0 }
  0xa3   : > { %4809 = vmatpush3.bf16.msra.mxu0 %v5359_v32  ;;  %v5365_v32 = vld [vmem:[%s6429_s1 + $0x158] sm:$0xff]   ;;  %v1402_v58 = vsel %vm5635_vm2, %v1397_v40, %v1401_v38  ;;  %v1963_v28 = vrot.slane %v1961_v23, 5  ;;  %v5394_v38 = vld [vmem:[%s5578_s27 + $0x60] ss:$8 sps:$4 sm:$0xff]  }
  0xa4   : > { %4818 = vmatprep.subr.bf16.mxu0 %v5361_v35  ;;  %v4115_v62 = vcombine.low %v1402_v58, %v1416_v59  ;;  %v5395_v40 = vld [vmem:[%s6429_s1 + $0x208] sm:$0xff]  }
  0xa5   : > { %v1964_v34 = vor.u32 %v1963_v28, %v1960_v27 }
  0xa6   : > { %4811 = vmatmul.mubr.bf16.vlgmr.msra.gmra.mrb[0].mxu0 %v5362_v44  ;;  %v5404_v44 = vld [vmem:[%s6432_s4 + $0x40] sm:$0xff]  }
  0xa7   : > { %4819 = vmatpush3.bf16.msra.mxu0 %v5361_v35  ;;  %4814 = vmatprep.mubr.bf16.mxu0 %v5368_v55  ;;  %v1387_v35 = vrot.slane %v1385_v61, 5  ;;  %v5372_v55 = vld [vmem:[%s6429_s1 + $0x180] sm:$0xff]   ;;  %v5373_v61 = vld [vmem:[%s6429_s1 + $0x188] sm:$0xff]   ;;  %v1965_v41 = vrot.slane %v1964_v34, 4  ;;  %v4210_v34 = vld [vmem:[%s5578_s27 + $0x3c] sm:$0x1] }
  0xa8   : > { %4820 = vmatprep.subr.bf16.mxu0 %v5363_v54  ;;  %4914 = vmatprep.subr.bf16.mxu1 %v5404_v44 }
  0xa9   : > { %4915 = vmatpush3.bf16.msra.mxu1 %v5404_v44  ;;  %v1388_v57 = vsel %vm5635_vm2, %v1383_v37, %v1387_v35  ;;  %v1967_v35 = vshll.u32 %v4198_v31, 16 }
  0xaa   : > { %4916 = vmatprep.subr.bf16.mxu1 %v5405_v45  ;;  %v4114_v60 = vcombine.low %v1374_v56, %v1388_v57 }
  0xab   : > { %4821 = vmatpush3.bf16.msra.mxu0 %v5363_v54  ;;  %v5371_v54 = vld [vmem:[%s6429_s1 + $0x178] sm:$0xff]   ;;  %v1969_v42 = vrot.slane %v1967_v35, 5 }
  0xac   : > { %4822 = vmatprep.subr.bf16.mxu0 %v5364_v8 }
  0xad   : > { %4917 = vmatpush3.bf16.msra.mxu1 %v5405_v45  ;;  %v5396_v45 = vld [vmem:[%s6429_s1 + $0x210] sm:$0xff]   ;;  %v1970_v47 = vsel %vm5635_vm2, %v1965_v41, %v1969_v42 }
  0xae   : > { %4815 = vmatmul.mubr.bf16.gmra.mrb[4].mxu0 %v5370_v24  ;;  %4918 = vmatprep.subr.bf16.mxu1 %v5406_v50  ;;  %v1972_v24 = vshrl.u32 %v4199_v20, 16 }
  0xaf   : > { %4823 = vmatpush3.bf16.msra.mxu0 %v5364_v8  ;;  %4834 = vmatprep.mubr.bf16.mxu0 %v4113_v29  ;;  %v5379_v8 = vld [vmem:[%s6429_s1 + $0x1b8] sm:$0xff]  }
  0xb0   : > { %4824 = vmatprep.subr.bf16.mxu0 %v5365_v32  ;;  %v1974_v29 = vrot.slane %v1972_v24, 4  ;;  %v5402_v24 = vld [vmem:[%s6429_s1 + $0x230] sm:$0xff]  }
  0xb1   : > { %4919 = vmatpush3.bf16.msra.mxu1 %v5406_v50 }
  0xb2   : > { %4920 = vmatprep.subr.bf16.mxu1 %v5407_v52  ;;  %v1978_v36 = vor.u32 %v1977_v30, %v1974_v29  ;;  %v5403_v29 = vld [vmem:[%s6429_s1 + $0x238] sm:$0xff]  }
  0xb3   : > { %4825 = vmatpush3.bf16.msra.mxu0 %v5365_v32  ;;  %v4200_v32 = vld [vmem:[%s5578_s27 + $0x14] sm:$0x1] }
  0xb4   : > { %4826 = vmatprep.subr.bf16.mxu0 %v5366_v39  ;;  %v1981_v37 = vshll.u32 %v4200_v32, 16  ;;  %v1979_v43 = vrot.slane %v1978_v36, 4 }
  0xb5   : > { %4921 = vmatpush3.bf16.msra.mxu1 %v5407_v52  ;;  %v4203_v52 = vld [vmem:[%s5578_s27 + $0x20] sm:$0xf] }
  0xb6   : > { %v1983_v44 = vrot.slane %v1981_v37, 5  ;;  %v2000_v58 = vshrl.u32 %v4203_v52, 16  ;;  %v2003_v59 = vshll.u32 %v4203_v52, 16 }
  0xb7   : > { %4827 = vmatpush3.bf16.msra.mxu0 %v5366_v39  ;;  %v5400_v39 = vld [vmem:[%s5578_s27 + $0x70] ss:$8 sps:$4 sm:$0xff]  }
  0xb8   : > { %4828 = vmatprep.subr.bf16.mxu0 %v5367_v51  ;;  %v1984_v48 = vsel %vm5635_vm2, %v1979_v43, %v1983_v44  ;;  %v4212_v43 = vld [vmem:[%s5578_s27 + $0x44] sm:$0x1] }
  0xb9   : > { %v4229_v50 = vcombine.low %v1970_v47, %v1984_v48 }
  0xbb   : > { %4829 = vmatpush3.bf16.msra.mxu0 %v5367_v51  ;;  %v4201_v51 = vld [vmem:[%s5578_s27 + $0x18] sm:$0xf] }
  0xbc   : > { %4830 = vmatprep.subr.bf16.mxu0 %v5369_v53  ;;  %v1986_v56 = vshrl.u32 %v4201_v51, 16  ;;  %v1989_v57 = vshll.u32 %v4201_v51, 16 }
  0xbf   : > { %4831 = vmatpush3.bf16.msra.mxu0 %v5369_v53  ;;  %v5397_v53 = vld [vmem:[%s6429_s1 + $0x218] sm:$0xff]  }
  0xc0   : > { %4832 = vmatprep.subr.bf16.mxu0 %v5371_v54 }
  0xc3   : > { %4833 = vmatpush3.bf16.msra.mxu0 %v5371_v54  ;;  %v4205_v54 = vld [vmem:[%s5578_s27 + $0x28] sm:$0xf] }
  0xc4   : > { %4842 = vmatprep.subr.bf16.mxu0 %v5372_v55 }
  0xc6   : > { %4835 = vmatmul.mubr.bf16.vlgmr.msra.gmra.mrb[0].mxu0 %v4114_v60  ;;  %v5398_v60 = vld [vmem:[%s6429_s1 + $0x220] sm:$0xff]  }
  0xc7   : > { %4843 = vmatpush3.bf16.msra.mxu0 %v5372_v55  ;;  %4838 = vmatprep.mubr.bf16.mxu0 %v4115_v62  ;;  %v4207_v55 = vld [vmem:[%s5578_s27 + $0x30] sm:$0xf]  ;;  %v2017_v62 = vshll.u32 %v4205_v54, 16 }
  0xc8   : > { %4844 = vmatprep.subr.bf16.mxu0 %v5373_v61  ;;  %v2028_v63 = vshrl.u32 %v4207_v55, 16  ;;  %v2031_v0 = vshll.u32 %v4207_v55, 16 }
  0xcb   : > { %4845 = vmatpush3.bf16.msra.mxu0 %v5373_v61  ;;  %v2014_v61 = vshrl.u32 %v4205_v54, 16 }
  0xcc   : > { %4846 = vmatprep.subr.bf16.mxu0 %v5374_v1 }
  0xce   : > { %4839 = vmatmul.mubr.bf16.gmra.mrb[4].mxu0 %v4116_v2  ;;  %v1988_v2 = vrot.slane %v1986_v56, 4 }
  0xcf   : > { %4847 = vmatpush3.bf16.msra.mxu0 %v5374_v1  ;;  %4858 = vmatprep.mubr.bf16.mxu0 %v5380_v3  ;;  %v5399_v1 = vld [vmem:[%s6429_s1 + $0x228] sm:$0xff]   ;;  %v1991_v3 = vrot.slane %v1989_v57, 5 }
  0xd0   : > { %4848 = vmatprep.subr.bf16.mxu0 %v5375_v4 }
  0xd3   : > { %4849 = vmatpush3.bf16.msra.mxu0 %v5375_v4  ;;  %v2002_v4 = vrot.slane %v2000_v58, 4 }
  0xd4   : > { %4850 = vmatprep.subr.bf16.mxu0 %v5376_v5 }
  0xd7   : > { %4851 = vmatpush3.bf16.msra.mxu0 %v5376_v5  ;;  %v2005_v5 = vrot.slane %v2003_v59, 5 }
  0xd8   : > { %4852 = vmatprep.subr.bf16.mxu0 %v5377_v6 }
  0xdb   : > { %4853 = vmatpush3.bf16.msra.mxu0 %v5377_v6  ;;  %v4202_v6 = vld [vmem:[%s5578_s27 + $0x1c] sm:$0x1] }
  0xdc   : > { %4854 = vmatprep.subr.bf16.mxu0 %v5378_v7 }
  0xdf   : > { %4855 = vmatpush3.bf16.msra.mxu0 %v5378_v7  ;;  %v4204_v7 = vld [vmem:[%s5578_s27 + $0x24] sm:$0x1] }
  0xe0   : > { %4856 = vmatprep.subr.bf16.mxu0 %v5379_v8  ;;  %v2009_v19 = vshll.u32 %v4204_v7, 16 }
  0xe3   : > { %4857 = vmatpush3.bf16.msra.mxu0 %v5379_v8  ;;  %v4209_v8 = vld [vmem:[%s5578_s27 + $0x38] sm:$0xf] }
  0xe4   : > { %4866 = vmatprep.subr.bf16.mxu0 %v5381_v9  ;;  %v2042_v20 = vshrl.u32 %v4209_v8, 16 }
  0xe6   : > { %4859 = vmatmul.mubr.bf16.vlgmr.msra.gmra.mrb[0].mxu0 %v5382_v10  ;;  %v2019_v10 = vrot.slane %v2017_v62, 5  ;;  %v2044_v35 = vrot.slane %v2042_v20, 4  ;;  %v5408_v62 = vld [vmem:[%s6432_s4 + $0x60] sm:$0xff]  }
  0xe7   : > { %4867 = vmatpush3.bf16.msra.mxu0 %v5381_v9  ;;  %4862 = vmatprep.mubr.bf16.mxu0 %v5388_v11  ;;  %v2016_v9 = vrot.slane %v2014_v61, 4  ;;  %v2030_v11 = vrot.slane %v2028_v63, 4  ;;  %v5409_v63 = vld [vmem:[%s6432_s4 + $0x68] sm:$0xff]  }
  0xe8   : > { %4868 = vmatprep.subr.bf16.mxu0 %v5383_v12  ;;  %4922 = vmatprep.subr.bf16.mxu1 %v5408_v62 }
  0xe9   : > { %v2020_v25 = vor.u32 %v2019_v10, %v2016_v9  ;;  %4923 = vmatpush3.bf16.msra.mxu1 %v5408_v62 }
  0xea   : > { %4924 = vmatprep.subr.bf16.mxu1 %v5409_v63 }
  0xeb   : > { %4869 = vmatpush3.bf16.msra.mxu0 %v5383_v12  ;;  %v2033_v12 = vrot.slane %v2031_v0, 5  ;;  %v5496_v0 = vmov 0.0  }
  0xec   : > { %4870 = vmatprep.subr.bf16.mxu0 %v5384_v13  ;;  %2267 = vst [vmem:[#allocation2 + $0x30] sm:$0xff] %v5496_v0  ;;  %2268 = vst [vmem:[#allocation2 + $0x38] sm:$0x3] %v5496_v0 }
  0xed   : > { %v2034_v27 = vor.u32 %v2033_v12, %v2030_v11  ;;  %2261 = vst [vmem:[#allocation2] sm:$0xff] %v5496_v0  ;;  %2262 = vst [vmem:[#allocation2 + $0x8] sm:$0x3] %v5496_v0  ;;  %4925 = vmatpush3.bf16.msra.mxu1 %v5409_v63  ;;  %v5418_v63 = vld [vmem:[%s6432_s4 + $0x30] sm:$0xff]  }
  0xee   : > { %4863 = vmatmul.mubr.bf16.gmra.mrb[4].mxu0 %v5390_v14  ;;  %v4206_v14 = vld [vmem:[%s5578_s27 + $0x2c] sm:$0x1]  ;;  %2263 = vst [vmem:[#allocation2 + $0x10] sm:$0xff] %v5496_v0  ;;  %2264 = vst [vmem:[#allocation2 + $0x18] sm:$0x3] %v5496_v0  ;;  %4926 = vmatprep.subr.bf16.mxu1 %v5410_v46 }
  0xef   : > { %4871 = vmatpush3.bf16.msra.mxu0 %v5384_v13  ;;  %4882 = vmatprep.mubr.bf16.mxu0 %v5392_v15  ;;  %v4211_v13 = vld [vmem:[%s5578_s27 + $0x40] sm:$0xf]  ;;  %v4208_v15 = vld [vmem:[%s5578_s27 + $0x34] sm:$0x1]  ;;  %v2035_v41 = vrot.slane %v2034_v27, 4  ;;  %2265 = vst [vmem:[#allocation2 + $0x20] sm:$0xff] %v5496_v0 }
  0xf0   : > { %4872 = vmatprep.subr.bf16.mxu0 %v5385_v16  ;;  %v2056_v22 = vshrl.u32 %v4211_v13, 16  ;;  %v2059_v23 = vshll.u32 %v4211_v13, 16  ;;  %v2037_v28 = vshll.u32 %v4208_v15, 16  ;;  %2266 = vst [vmem:[#allocation2 + $0x28] sm:$0x3] %v5496_v0  ;;  %2269 = vst [vmem:[#allocation2 + $0x40] sm:$0xff] %v5496_v0 }
  0xf1   : > { %2270 = vst [vmem:[#allocation2 + $0x48] sm:$0x3] %v5496_v0  ;;  %2271 = vst [vmem:[#allocation2 + $0x50] sm:$0xff] %v5496_v0  ;;  %4927 = vmatpush3.bf16.msra.mxu1 %v5410_v46  ;;  %v5419_v46 = vld [vmem:[%s6432_s4 + $0x38] sm:$0xff]  }
  0xf2   : > { %v2058_v37 = vrot.slane %v2056_v22, 4  ;;  %v2039_v42 = vrot.slane %v2037_v28, 5  ;;  %2272 = vst [vmem:[#allocation2 + $0x58] sm:$0x3] %v5496_v0  ;;  %2273 = vst [vmem:[#allocation2 + $0x60] sm:$0xff] %v5496_v0 }
  0xf3   : > { %4873 = vmatpush3.bf16.msra.mxu0 %v5385_v16  ;;  %v1992_v16 = vor.u32 %v1991_v3, %v1988_v2  ;;  %2274 = vst [vmem:[#allocation2 + $0x68] sm:$0x3] %v5496_v0  ;;  %2275 = vst [vmem:[#allocation2 + $0x70] sm:$0xff] %v5496_v0  ;;  %v5412_v2 = vld [vmem:[%s6432_s4] sm:$0xff]  }
  0xf4   : > { %4874 = vmatprep.subr.bf16.mxu0 %v5386_v17  ;;  %v2040_v52 = vsel %vm5635_vm2, %v2035_v41, %v2039_v42  ;;  %2276 = vst [vmem:[#allocation2 + $0x78] sm:$0x3] %v5496_v0  ;;  %2277 = vst [vmem:[#allocation2 + $0x80] sm:$0xff] %v5496_v0  ;;  %v4241_v3 = vld [vmem:[%s6430_s2] ss:$0 sm:$0xff]  ;;  %v5414_v41 = vld [vmem:[%s6432_s4 + $0x10] sm:$0xff]  }
  0xf5   : > { %v1993_v30 = vrot.slane %v1992_v16, 4  ;;  %2278 = vst [vmem:[#allocation2 + $0x88] sm:$0x3] %v5496_v0  ;;  %2279 = vst [vmem:[#allocation2 + $0x90] sm:$0xff] %v5496_v0 }
  0xf6   : > { %2280 = vst [vmem:[#allocation2 + $0x98] sm:$0x3] %v5496_v0 }
  0xf7   : > { %4875 = vmatpush3.bf16.msra.mxu0 %v5386_v17  ;;  %v1995_v17 = vshll.u32 %v4202_v6, 16 }
  0xf8   : > { %4876 = vmatprep.subr.bf16.mxu0 %v5387_v18 }
  0xf9   : > { %v1997_v31 = vrot.slane %v1995_v17, 5  ;;  %v2318_v17 = vld [vmem:[#allocation2 + $0x1] sm:$0xff] }
  0xfb   : > { %4877 = vmatpush3.bf16.msra.mxu0 %v5387_v18  ;;  %v2006_v18 = vor.u32 %v2005_v5, %v2002_v4  ;;  %v1998_v44 = vsel %vm5635_vm2, %v1993_v30, %v1997_v31  ;;  %v4242_v5 = vld [vmem:[%s6431_s3] ss:$0 sm:$0xff]  ;;  %v5413_v30 = vld [vmem:[%s6432_s4 + $0x8] sm:$0xff]  }
  0xfc   : > { %4878 = vmatprep.subr.bf16.mxu0 %v5389_v21 }
  0xfd   : > { %v2007_v32 = vrot.slane %v2006_v18, 4 }
  0xff   : > { %4879 = vmatpush3.bf16.msra.mxu0 %v5389_v21  ;;  %v2045_v21 = vshll.u32 %v4209_v8, 16 }
 0x100   : > { %4880 = vmatprep.subr.bf16.mxu0 %v5391_v26 }
 0x101   : > { %v2047_v36 = vrot.slane %v2045_v21, 5 }
 0x103   : > { %4881 = vmatpush3.bf16.msra.mxu0 %v5391_v26  ;;  %v2023_v26 = vshll.u32 %v4206_v14, 16  ;;  %v2048_v48 = vor.u32 %v2047_v36, %v2044_v35 }
 0x104   : > { %4890 = vmatprep.subr.bf16.mxu0 %v5393_v33 }
 0x105   : > { %v2049_v56 = vrot.slane %v2048_v48, 4 }
 0x106   : > { %4883 = vmatmul.mubr.bf16.vlgmr.msra.gmra.mrb[0].mxu0 %v5394_v38  ;;  %v2061_v38 = vrot.slane %v2059_v23, 5 }
 0x107   : > { %4891 = vmatpush3.bf16.msra.mxu0 %v5393_v33  ;;  %4886 = vmatprep.mubr.bf16.mxu0 %v5400_v39  ;;  %v2011_v33 = vrot.slane %v2009_v19, 5  ;;  %v2021_v39 = vrot.slane %v2020_v25, 4 }
 0x108   : > { %4892 = vmatprep.subr.bf16.mxu0 %v5395_v40 }
 0x109   : > { %v2012_v47 = vsel %vm5635_vm2, %v2007_v32, %v2011_v33 }
 0x10b   : > { %4893 = vmatpush3.bf16.msra.mxu0 %v5395_v40  ;;  %v2025_v40 = vrot.slane %v2023_v26, 5 }
 0x10c   : > { %4894 = vmatprep.subr.bf16.mxu0 %v5396_v45 }
 0x10d   : > { %v2026_v51 = vsel %vm5635_vm2, %v2021_v39, %v2025_v40 }
 0x10e   : > { %4887 = vmatmul.mubr.bf16.gmra.mrb[4].mxu0 %v5401_v49  ;;  %v2062_v49 = vor.u32 %v2061_v38, %v2058_v37  ;;  %v4231_v55 = vcombine.low %v2026_v51, %v2040_v52 }
 0x10f   : > { %4895 = vmatpush3.bf16.msra.mxu0 %v5396_v45  ;;  %4906 = vmatprep.mubr.bf16.mxu0 %v4229_v50  ;;  %v2051_v45 = vshll.u32 %v4210_v34, 16  ;;  %v2065_v50 = vshll.u32 %v4212_v43, 16 }
 0x110   : > { %4896 = vmatprep.subr.bf16.mxu0 %v5397_v53  ;;  %v2063_v57 = vrot.slane %v2062_v49, 4 }
 0x111   : > { %v2053_v54 = vrot.slane %v2051_v45, 5  ;;  %v2067_v58 = vrot.slane %v2065_v50, 5 }
 0x113   : > { %4897 = vmatpush3.bf16.msra.mxu0 %v5397_v53  ;;  %v4230_v53 = vcombine.low %v1998_v44, %v2012_v47  ;;  %v2054_v59 = vsel %vm5635_vm2, %v2049_v56, %v2053_v54 }
 0x114   : > { %4898 = vmatprep.subr.bf16.mxu0 %v5398_v60 }
 0x117   : > { %4899 = vmatpush3.bf16.msra.mxu0 %v5398_v60  ;;  %v2068_v60 = vsel %vm5635_vm2, %v2063_v57, %v2067_v58  ;;  %v5416_v58 = vld [vmem:[%s6432_s4 + $0x20] sm:$0xff]  }
 0x118   : > { %4900 = vmatprep.subr.bf16.mxu0 %v5399_v1  ;;  %v4232_v61 = vcombine.low %v2054_v59, %v2068_v60 }
 0x11b   : > { %4901 = vmatpush3.bf16.msra.mxu0 %v5399_v1  ;;  %v5411_v1 = vld [vmem:[%s6432_s4 + $0x78] sm:$0xff]  }
 0x11c   : > { %4902 = vmatprep.subr.bf16.mxu0 %v5402_v24  ;;  %4928 = vmatprep.subr.bf16.mxu1 %v5411_v1 }
 0x11d   : > { %4929 = vmatpush3.bf16.msra.mxu1 %v5411_v1  ;;  %v5420_v1 = vld [vmem:[%s6432_s4 + $0x80] sm:$0xff]  }
 0x11e   : > { %4938 = vmatprep.subr.bf16.mxu1 %v5412_v2 }
 0x11f   : > { %4903 = vmatpush3.bf16.msra.mxu0 %v5402_v24 }
 0x120   : > { %4904 = vmatprep.subr.bf16.mxu0 %v5403_v29 }
 0x123   : > { %4905 = vmatpush3.bf16.msra.mxu0 %v5403_v29 }
 0x126   : > { %4907 = vmatmul.mubr.bf16.vlgmr.msra.gmra.mrb[0].mxu0 %v4230_v53  ;;  %v5415_v53 = vld [vmem:[%s6432_s4 + $0x18] sm:$0xff]  }
 0x127   : > { %4910 = vmatprep.mubr.bf16.mxu0 %v4231_v55 }
 0x12e   : > { %4911 = vmatmul.mubr.bf16.gmra.mrb[4].mxu0 %v4232_v61  ;;  %v5417_v61 = vld [vmem:[%s6432_s4 + $0x28] sm:$0xff]  }
 0x1f9   : > { %v4908_v4 = vpop.f32.mrb[0].mxu0 }
 0x1fa   : > { %v2232_v6 = vmul.f32 %v4908_v4, %v4241_v3  ;;  %v2184_v7 = vpop.f32.mrb[1].mxu0 }
 0x1fb   : > { %v2230_v8 = vmul.f32 %v4241_v3, %v2184_v7  ;;  %v4909_v9 = vpop.f32.mrb[2].mxu0  ;;  %v5421_v7 = vld [vmem:[%s6432_s4 + $0x88] sm:$0xff]  }
 0x1fc   : > { %v2247_v10 = vadd.f32 %v4242_v5, %v2232_v6  ;;  %v2233_v11 = vmul.f32 %v4909_v9, %v4241_v3  ;;  %v2187_v12 = vpop.f32.mrb[3].mxu0  ;;  %v5422_v9 = vld [vmem:[%s6432_s4 + $0x90] sm:$0xff]  }
 0x1fd   : > { %v2245_v13 = vadd.f32 %v4242_v5, %v2230_v8  ;;  %v2231_v14 = vmul.f32 %v4241_v3, %v2187_v12 }
 0x1fe   : > { %v5974_v15 = vmax.f32 %v2247_v10, 0.0  ;;  %v2248_v16 = vadd.f32 %v4242_v5, %v2233_v11  ;;  %v2573_v11 = vld [vmem:[#allocation2 + $0x2] sm:$0xff] }
 0x1ff   : > { %v5976_v18 = vmax.f32 %v2245_v13, 0.0  ;;  %v2246_v19 = vadd.f32 %v4242_v5, %v2231_v14  ;;  %v5423_v14 = vld [vmem:[%s6432_s4 + $0x98] sm:$0xff]  }
 0x200   : > { %2284 = vst [vmem:[#allocation2 + $0x31] sm:$0xff] %v5974_v15  ;;  %v5979_v20 = vmax.f32 %v2248_v16, 0.0 }
 0x201   : > { %2282 = vst [vmem:[#allocation2 + $0x11] sm:$0xff] %v5976_v18  ;;  %v5982_v21 = vmax.f32 %v2246_v19, 0.0  ;;  %v4912_v22 = vpop.f32.mrb[4].mxu0  ;;  %v2326_v23 = vpack.c.bf16 %v5976_v18, %v2318_v17  ;;  %v5424_v17 = vld [vmem:[%s6432_s4 + $0xa0] sm:$0xff]   ;;  %v5425_v19 = vld [vmem:[%s6432_s4 + $0xa8] sm:$0xff]  }
 0x202   : > { %2285 = vst [vmem:[#allocation2 + $0x41] sm:$0xff] %v5979_v20  ;;  %v2236_v24 = vmul.f32 %v4912_v22, %v4241_v3  ;;  %v2200_v25 = vpop.f32.mrb[5].mxu0  ;;  %v2882_v26 = vpack.c.bf16 %v5979_v20, %v5974_v15  ;;  %v5426_v22 = vld [vmem:[%s6432_s4 + $0xb0] sm:$0xff]  }
 0x203   : > { %2283 = vst [vmem:[#allocation2 + $0x21] sm:$0xff] %v5982_v21  ;;  %v2234_v27 = vmul.f32 %v4241_v3, %v2200_v25  ;;  %v4913_v28 = vpop.f32.mrb[6].mxu0  ;;  %4930 = vmatprep.mubr.bf16.mxu1 %v2326_v23  ;;  %v5991_v29 = vpack.c.bf16 %v5974_v15, %v5982_v21  ;;  %v2881_v31 = vpack.c.bf16 %v5982_v21, %v5976_v18  ;;  %v5427_v23 = vld [vmem:[%s6432_s4 + $0xb8] sm:$0xff]   ;;  %v5441_v18 = vld [vmem:[%s6432_s4 + $0x128] sm:$0xff]   ;;  %v6216_v21 = vld [vmem:[%s6435_s7 + $0x20] sm:$0xff]  }
 0x204   : > { %v2251_v32 = vadd.f32 %v4242_v5, %v2236_v24  ;;  %v2237_v33 = vmul.f32 %v4913_v28, %v4241_v3  ;;  %v2203_v34 = vpop.f32.mrb[7].mxu0  ;;  %v5428_v24 = vld [vmem:[%s6432_s4 + $0xc0] sm:$0xff]  }
 0x205   : > { %v2249_v35 = vadd.f32 %v4242_v5, %v2234_v27  ;;  %v2235_v36 = vmul.f32 %v4241_v3, %v2203_v34  ;;  %4931 = vmatmul.mubr.bf16.vlgmr.msra.gmra.mrb[0].mxu1 %v5991_v29  ;;  %v5429_v27 = vld [vmem:[%s6432_s4 + $0xc8] sm:$0xff]   ;;  %v5431_v34 = vld [vmem:[%s6432_s4 + $0xd8] sm:$0xff]   ;;  %v5448_v15 = vld [vmem:[%s6432_s4 + $0x160] sm:$0xff]  }
 0x206   : > { %v5999_v37 = vmax.f32 %v2251_v32, 0.0  ;;  %v2252_v38 = vadd.f32 %v4242_v5, %v2237_v33  ;;  %4939 = vmatpush3.bf16.msra.mxu1 %v5412_v2 }
 0x207   : > { %v6001_v39 = vmax.f32 %v2249_v35, 0.0  ;;  %v2250_v40 = vadd.f32 %v4242_v5, %v2235_v36  ;;  %4940 = vmatprep.subr.bf16.mxu1 %v5413_v30  ;;  %v6018_v47 = vld [vmem:[#allocation2 + $0x32] sm:$0xff]  ;;  %v5432_v36 = vld [vmem:[%s6432_s4 + $0xe0] sm:$0xff]  }
 0x208   : > { %2288 = vst [vmem:[#allocation2 + $0x71] sm:$0xff] %v5999_v37  ;;  %v6007_v42 = vmax.f32 %v2252_v38, 0.0  ;;  %v6016_v45 = vld [vmem:[#allocation2 + $0x10] sm:$0xff]  ;;  %v5433_v38 = vld [vmem:[%s6432_s4 + $0xe8] sm:$0xff]  }
 0x209   : > { %2286 = vst [vmem:[#allocation2 + $0x51] sm:$0xff] %v6001_v39  ;;  %v6010_v43 = vmax.f32 %v2250_v40, 0.0  ;;  %v6014_v44 = vpack.c.bf16 %v6001_v39, %v5979_v20  ;;  %v6020_v48 = vld [vmem:[#allocation2 + $0x42] sm:$0xff]  ;;  %v6038_v54 = vld [vmem:[#allocation2 + $0x12] sm:$0xff]  ;;  %v2298_v55 = vpack.c.bf16 %v6016_v45, %v5496_v0 }
 0x20a   : > { %2289 = vst [vmem:[#allocation2 + $0x81] sm:$0xff] %v6007_v42  ;;  %4941 = vmatpush3.bf16.msra.mxu1 %v5413_v30  ;;  %v6023_v49 = vld [vmem:[#allocation2 + $0x22] sm:$0xff]  ;;  %v2884_v50 = vpack.c.bf16 %v6007_v42, %v5999_v37  ;;  %v3032_v51 = vpack.c.bf16 %v6020_v48, %v6018_v47  ;;  %v6070_v4 = vld [vmem:[#allocation2 + $0x30] sm:$0xff]  ;;  %v2581_v16 = vpack.c.bf16 %v6038_v54, %v2573_v11 }
 0x20b   : > { %2287 = vst [vmem:[#allocation2 + $0x61] sm:$0xff] %v6010_v43  ;;  %4934 = vmatprep.mubr.bf16.mxu1 %v6014_v44  ;;  %4942 = vmatprep.subr.bf16.mxu1 %v5414_v41  ;;  %v6033_v52 = vpack.c.bf16 %v5999_v37, %v6010_v43  ;;  %v2883_v56 = vpack.c.bf16 %v6010_v43, %v6001_v39  ;;  %v2292_v2 = vld [vmem:[#allocation2 + $0x20] sm:$0xff]  ;;  %v5430_v30 = vld [vmem:[%s6432_s4 + $0xd0] sm:$0xff]   ;;  %v5449_v20 = vld [vmem:[%s6432_s4 + $0x168] sm:$0xff]  }
 0x20c   : > { %v3031_v57 = vpack.c.bf16 %v6023_v49, %v6038_v54  ;;  %v6073_v5 = vpack.c.bf16 %v6070_v4, %v2292_v2  ;;  %v6075_v6 = vld [vmem:[#allocation2 + $0x40] sm:$0xff]  ;;  %v6119_v25 = vpack.c.bf16 %v6018_v47, %v6023_v49  ;;  %v2731_v35 = vpack.c.bf16 %v2292_v2, %v6016_v45  ;;  %v5434_v40 = vld [vmem:[%s6432_s4 + $0xf0] sm:$0xff]   ;;  %v5451_v37 = vld [vmem:[%s6432_s4 + $0x178] sm:$0xff]  }
 0x20d   : > { %4935 = vmatmul.mubr.bf16.gmra.mrb[4].mxu1 %v6033_v52  ;;  %v5436_v45 = vld [vmem:[%s6432_s4 + $0x100] sm:$0xff]   ;;  %v6236_v11 = vld [vmem:[%s6435_s7 + $0x30] sm:$0xff]   ;;  %v5453_v43 = vld [vmem:[%s6432_s4 + $0x188] sm:$0xff]  }
 0x20e   : > { %4943 = vmatpush3.bf16.msra.mxu1 %v5414_v41  ;;  %4954 = vmatprep.mubr.bf16.mxu1 %v2298_v55  ;;  %v5435_v41 = vld [vmem:[%s6432_s4 + $0xf8] sm:$0xff]   ;;  %v5437_v55 = vld [vmem:[%s6432_s4 + $0x108] sm:$0xff]   ;;  %v5452_v39 = vld [vmem:[%s6432_s4 + $0x180] sm:$0xff]  }
 0x20f   : > { %4944 = vmatprep.subr.bf16.mxu1 %v5415_v53  ;;  %v6091_v12 = vld [vmem:[#allocation2 + $0x70] sm:$0xff]  ;;  %v5455_v47 = vld [vmem:[%s6432_s4 + $0x198] sm:$0xff]  }
 0x210   : > { %v6050_v59 = vld [vmem:[#allocation2 + $0x52] sm:$0xff] }
 0x211   : > { %v6068_v3 = vld [vmem:[#allocation2 + $0x50] sm:$0xff]  ;;  %v6126_v28 = vpack.c.bf16 %v6050_v59, %v6020_v48  ;;  %v5456_v48 = vld [vmem:[%s6432_s4 + $0x1a0] sm:$0xff]  }
 0x212   : > { %4945 = vmatpush3.bf16.msra.mxu1 %v5415_v53  ;;  %v6052_v60 = vld [vmem:[#allocation2 + $0x62] sm:$0xff]  ;;  %v6082_v8 = vpack.c.bf16 %v6068_v3, %v6075_v6  ;;  %v6133_v32 = vld [vmem:[#allocation2 + $0x72] sm:$0xff]  ;;  %v2732_v53 = vpack.c.bf16 %v6075_v6, %v6070_v4 }
 0x213   : > { %4946 = vmatprep.subr.bf16.mxu1 %v5416_v58  ;;  %v3033_v62 = vpack.c.bf16 %v6052_v60, %v6050_v59  ;;  %v6089_v10 = vld [vmem:[#allocation2 + $0x60] sm:$0xff]  ;;  %v6137_v33 = vpack.c.bf16 %v6133_v32, %v6052_v60  ;;  %v6193_v4 = vld [vmem:[%s6435_s7 + $0x10] sm:$0xff]   ;;  %v5461_v60 = vld [vmem:[%s6432_s4 + $0x1c8] sm:$0xff]  }
 0x214   : > { %v6095_v13 = vpack.c.bf16 %v6091_v12, %v6089_v10  ;;  %v5440_v6 = vld [vmem:[%s6432_s4 + $0x120] sm:$0xff]   ;;  %v5454_v49 = vld [vmem:[%s6432_s4 + $0x190] sm:$0xff]  }
 0x215   : > { %v5460_v59 = vld [vmem:[%s6432_s4 + $0x1c0] sm:$0xff]  }
 0x216   : > { %4947 = vmatpush3.bf16.msra.mxu1 %v5416_v58  ;;  %v6167_v58 = vld [vmem:[%s6435_s7] sm:$0xff]  }
 0x217   : > { %4948 = vmatprep.subr.bf16.mxu1 %v5417_v61  ;;  %5130 = vmatprep.subr.bf16.mxu0 %v6167_v58 }
 0x218   : > { %5131 = vmatpush3.bf16.msra.mxu0 %v6167_v58 }
 0x21a   : > { %4949 = vmatpush3.bf16.msra.mxu1 %v5417_v61  ;;  %v2733_v61 = vpack.c.bf16 %v6089_v10, %v6068_v3  ;;  %v5439_v3 = vld [vmem:[%s6432_s4 + $0x118] sm:$0xff]  }
 0x21b   : > { %4950 = vmatprep.subr.bf16.mxu1 %v5418_v63  ;;  %v5443_v10 = vld [vmem:[%s6432_s4 + $0x138] sm:$0xff]  }
 0x21e   : > { %4951 = vmatpush3.bf16.msra.mxu1 %v5418_v63  ;;  %v5438_v63 = vld [vmem:[%s6432_s4 + $0x110] sm:$0xff]  }
 0x21f   : > { %4952 = vmatprep.subr.bf16.mxu1 %v5419_v46 }
 0x222   : > { %4953 = vmatpush3.bf16.msra.mxu1 %v5419_v46  ;;  %v6179_v46 = vld [vmem:[%s6435_s7 + $0x8] sm:$0xff]  }
 0x223   : > { %4962 = vmatprep.subr.bf16.mxu1 %v5420_v1  ;;  %5132 = vmatprep.subr.bf16.mxu0 %v6179_v46 }
 0x224   : > { %5133 = vmatpush3.bf16.msra.mxu0 %v6179_v46 }
 0x225   : > { %4955 = vmatmul.mubr.bf16.vlgmr.msra.gmra.mrb[0].mxu1 %v6073_v5  ;;  %5134 = vmatprep.subr.bf16.mxu0 %v6193_v4 }
 0x226   : > { %4958 = vmatprep.mubr.bf16.mxu1 %v6082_v8  ;;  %4963 = vmatpush3.bf16.msra.mxu1 %v5420_v1  ;;  %v6181_v1 = vld [vmem:[#allocation2 + $0x80] sm:$0xff] }
 0x227   : > { %4964 = vmatprep.subr.bf16.mxu1 %v5421_v7  ;;  %v2734_v2 = vpack.c.bf16 %v6181_v1, %v6091_v12  ;;  %v5444_v12 = vld [vmem:[%s6432_s4 + $0x140] sm:$0xff]  }
 0x228   : > { %5135 = vmatpush3.bf16.msra.mxu0 %v6193_v4 }
 0x22a   : > { %4965 = vmatpush3.bf16.msra.mxu1 %v5421_v7  ;;  %v6206_v7 = vld [vmem:[%s6435_s7 + $0x18] sm:$0xff]  }
 0x22b   : > { %4966 = vmatprep.subr.bf16.mxu1 %v5422_v9  ;;  %5136 = vmatprep.subr.bf16.mxu0 %v6206_v7 }
 0x22c   : > { %5137 = vmatpush3.bf16.msra.mxu0 %v6206_v7 }
 0x22d   : > { %4959 = vmatmul.mubr.bf16.gmra.mrb[4].mxu1 %v6095_v13  ;;  %5138 = vmatprep.subr.bf16.mxu0 %v6216_v21 }
 0x22e   : > { %4967 = vmatpush3.bf16.msra.mxu1 %v5422_v9  ;;  %4978 = vmatprep.mubr.bf16.mxu1 %v2581_v16  ;;  %v6226_v9 = vld [vmem:[%s6435_s7 + $0x28] sm:$0xff]   ;;  %v5484_v16 = vld [vmem:[%s5578_s27 + $0xd8] ss:$8 sps:$4 sm:$0xff]  }
 0x22f   : > { %4968 = vmatprep.subr.bf16.mxu1 %v5423_v14  ;;  %5146 = vmatprep.mubr.bf16.mxu0 %v5484_v16 }
 0x230   : > { %5139 = vmatpush3.bf16.msra.mxu0 %v6216_v21 }
 0x231   : > { %5140 = vmatprep.subr.bf16.mxu0 %v6226_v9 }
 0x232   : > { %4969 = vmatpush3.bf16.msra.mxu1 %v5423_v14  ;;  %v6246_v14 = vld [vmem:[%s6435_s7 + $0x38] sm:$0xff]  }
 0x233   : > { %4970 = vmatprep.subr.bf16.mxu1 %v5424_v17 }
 0x234   : > { %5141 = vmatpush3.bf16.msra.mxu0 %v6226_v9 }
 0x235   : > { %5142 = vmatprep.subr.bf16.mxu0 %v6236_v11 }
 0x236   : > { %4971 = vmatpush3.bf16.msra.mxu1 %v5424_v17  ;;  %v5445_v17 = vld [vmem:[%s6432_s4 + $0x148] sm:$0xff]  }
 0x237   : > { %4972 = vmatprep.subr.bf16.mxu1 %v5425_v19 }
 0x238   : > { %5143 = vmatpush3.bf16.msra.mxu0 %v6236_v11 }
 0x239   : > { %5144 = vmatprep.subr.bf16.mxu0 %v6246_v14 }
 0x23a   : > { %4973 = vmatpush3.bf16.msra.mxu1 %v5425_v19  ;;  %v5485_v19 = vld [vmem:[%s5578_s27 + $0xe8] ss:$8 sps:$4 sm:$0xff]  }
 0x23b   : > { %4974 = vmatprep.subr.bf16.mxu1 %v5426_v22 }
 0x23c   : > { %5145 = vmatpush3.bf16.msra.mxu0 %v6246_v14 }
 0x23e   : > { %4975 = vmatpush3.bf16.msra.mxu1 %v5426_v22  ;;  %v5446_v22 = vld [vmem:[%s6432_s4 + $0x150] sm:$0xff]  }
 0x23f   : > { %4976 = vmatprep.subr.bf16.mxu1 %v5427_v23  ;;  %5147 = vmatmul.mubr.bf16.vlgmr.msra.gmra.mrb[8].mxu0 %v5485_v19 }
 0x242   : > { %4977 = vmatpush3.bf16.msra.mxu1 %v5427_v23  ;;  %v5447_v23 = vld [vmem:[%s6432_s4 + $0x158] sm:$0xff]  }
 0x243   : > { %4986 = vmatprep.subr.bf16.mxu1 %v5428_v24 }
 0x245   : > { %4979 = vmatmul.mubr.bf16.vlgmr.msra.gmra.mrb[0].mxu1 %v6119_v25 }
 0x246   : > { %4982 = vmatprep.mubr.bf16.mxu1 %v6126_v28  ;;  %4987 = vmatpush3.bf16.msra.mxu1 %v5428_v24  ;;  %v5463_v24 = vld [vmem:[%s6432_s4 + $0x1d8] sm:$0xff]  }
 0x247   : > { %4988 = vmatprep.subr.bf16.mxu1 %v5429_v27 }
 0x24a   : > { %4989 = vmatpush3.bf16.msra.mxu1 %v5429_v27  ;;  %v5468_v27 = vld [vmem:[%s6432_s4 + $0x200] sm:$0xff]  }
 0x24b   : > { %4990 = vmatprep.subr.bf16.mxu1 %v5430_v30 }
 0x24d   : > { %4983 = vmatmul.mubr.bf16.gmra.mrb[4].mxu1 %v6137_v33 }
 0x24e   : > { %4991 = vmatpush3.bf16.msra.mxu1 %v5430_v30  ;;  %5002 = vmatprep.mubr.bf16.mxu1 %v2731_v35  ;;  %v5470_v30 = vld [vmem:[%s6432_s4 + $0x208] sm:$0xff]  }
 0x24f   : > { %4992 = vmatprep.subr.bf16.mxu1 %v5431_v34 }
 0x252   : > { %4993 = vmatpush3.bf16.msra.mxu1 %v5431_v34  ;;  %v3331_v34 = vld [vmem:[#allocation2 + $0x91] sm:$0xff] }
 0x253   : > { %4994 = vmatprep.subr.bf16.mxu1 %v5432_v36  ;;  %v3335_v35 = vpack.c.bf16 %v3331_v34, %v6007_v42  ;;  %v5478_v42 = vld [vmem:[%s6432_s4 + $0x228] sm:$0xff]  }
 0x256   : > { %4995 = vmatpush3.bf16.msra.mxu1 %v5432_v36  ;;  %v5474_v36 = vld [vmem:[%s6432_s4 + $0x218] sm:$0xff]  }
 0x257   : > { %4996 = vmatprep.subr.bf16.mxu1 %v5433_v38 }
 0x25a   : > { %4997 = vmatpush3.bf16.msra.mxu1 %v5433_v38  ;;  %v3481_v38 = vld [vmem:[#allocation2 + $0x92] sm:$0xff] }
 0x25b   : > { %4998 = vmatprep.subr.bf16.mxu1 %v5434_v40 }
 0x25e   : > { %4999 = vmatpush3.bf16.msra.mxu1 %v5434_v40  ;;  %v5486_v40 = vld [vmem:[%s5578_s27 + $0xf8] ss:$8 sps:$4 sm:$0xff]  }
 0x25f   : > { %5000 = vmatprep.subr.bf16.mxu1 %v5435_v41 }
 0x262   : > { %5001 = vmatpush3.bf16.msra.mxu1 %v5435_v41 }
 0x263   : > { %5010 = vmatprep.subr.bf16.mxu1 %v5436_v45 }
 0x265   : > { %5003 = vmatmul.mubr.bf16.vlgmr.msra.gmra.mrb[0].mxu1 %v2732_v53 }
 0x266   : > { %5006 = vmatprep.mubr.bf16.mxu1 %v2733_v61  ;;  %5011 = vmatpush3.bf16.msra.mxu1 %v5436_v45 }
 0x267   : > { %5012 = vmatprep.subr.bf16.mxu1 %v5437_v55 }
 0x26a   : > { %5013 = vmatpush3.bf16.msra.mxu1 %v5437_v55 }
 0x26b   : > { %5014 = vmatprep.subr.bf16.mxu1 %v5438_v63 }
 0x26d   : > { %5007 = vmatmul.mubr.bf16.gmra.mrb[4].mxu1 %v2734_v2 }
 0x26e   : > { %5015 = vmatpush3.bf16.msra.mxu1 %v5438_v63  ;;  %5026 = vmatprep.mubr.bf16.mxu1 %v2881_v31  ;;  %v5442_v31 = vld [vmem:[%s6432_s4 + $0x130] sm:$0xff]   ;;  %v4443_v63 = vld [vmem:[%s6433_s5] ss:$0 sm:$0xff] }
 0x26f   : > { %5016 = vmatprep.subr.bf16.mxu1 %v5439_v3 }
 0x272   : > { %5017 = vmatpush3.bf16.msra.mxu1 %v5439_v3 }
 0x273   : > { %5018 = vmatprep.subr.bf16.mxu1 %v5440_v6 }
 0x276   : > { %5019 = vmatpush3.bf16.msra.mxu1 %v5440_v6 }
 0x277   : > { %5020 = vmatprep.subr.bf16.mxu1 %v5441_v18 }
 0x27a   : > { %5021 = vmatpush3.bf16.msra.mxu1 %v5441_v18 }
 0x27b   : > { %5022 = vmatprep.subr.bf16.mxu1 %v5442_v31 }
 0x27e   : > { %5023 = vmatpush3.bf16.msra.mxu1 %v5442_v31 }
 0x27f   : > { %5024 = vmatprep.subr.bf16.mxu1 %v5443_v10 }
 0x282   : > { %5025 = vmatpush3.bf16.msra.mxu1 %v5443_v10 }
 0x283   : > { %5034 = vmatprep.subr.bf16.mxu1 %v5444_v12 }
 0x285   : > { %5027 = vmatmul.mubr.bf16.vlgmr.msra.gmra.mrb[0].mxu1 %v2882_v26  ;;  %v5450_v26 = vld [vmem:[%s6432_s4 + $0x170] sm:$0xff]  }
 0x286   : > { %5030 = vmatprep.mubr.bf16.mxu1 %v2883_v56  ;;  %5035 = vmatpush3.bf16.msra.mxu1 %v5444_v12  ;;  %v5458_v56 = vld [vmem:[%s6432_s4 + $0x1b0] sm:$0xff]  }
 0x287   : > { %5036 = vmatprep.subr.bf16.mxu1 %v5445_v17 }
 0x28a   : > { %5037 = vmatpush3.bf16.msra.mxu1 %v5445_v17 }
 0x28b   : > { %5038 = vmatprep.subr.bf16.mxu1 %v5446_v22 }
 0x28d   : > { %5031 = vmatmul.mubr.bf16.gmra.mrb[4].mxu1 %v2884_v50  ;;  %v6300_v50 = vld [vmem:[#allocation2 + $0x82] sm:$0xff] }
 0x28e   : > { %5039 = vmatpush3.bf16.msra.mxu1 %v5446_v22  ;;  %5050 = vmatprep.mubr.bf16.mxu1 %v3031_v57  ;;  %v3034_v54 = vpack.c.bf16 %v6300_v50, %v6133_v32  ;;  %v5459_v57 = vld [vmem:[%s6432_s4 + $0x1b8] sm:$0xff]   ;;  %v5472_v32 = vld [vmem:[%s6432_s4 + $0x210] sm:$0xff]   ;;  %v3485_v41 = vpack.c.bf16 %v3481_v38, %v6300_v50 }
 0x28f   : > { %5040 = vmatprep.subr.bf16.mxu1 %v5447_v23 }
 0x292   : > { %5041 = vmatpush3.bf16.msra.mxu1 %v5447_v23 }
 0x293   : > { %5042 = vmatprep.subr.bf16.mxu1 %v5448_v15 }
 0x296   : > { %5043 = vmatpush3.bf16.msra.mxu1 %v5448_v15 }
 0x297   : > { %5044 = vmatprep.subr.bf16.mxu1 %v5449_v20 }
 0x29a   : > { %5045 = vmatpush3.bf16.msra.mxu1 %v5449_v20 }
 0x29b   : > { %5046 = vmatprep.subr.bf16.mxu1 %v5450_v26 }
 0x29e   : > { %5047 = vmatpush3.bf16.msra.mxu1 %v5450_v26 }
 0x29f   : > { %5048 = vmatprep.subr.bf16.mxu1 %v5451_v37 }
 0x2a2   : > { %5049 = vmatpush3.bf16.msra.mxu1 %v5451_v37 }
 0x2a3   : > { %5058 = vmatprep.subr.bf16.mxu1 %v5452_v39 }
 0x2a5   : > { %5051 = vmatmul.mubr.bf16.vlgmr.msra.gmra.mrb[0].mxu1 %v3032_v51  ;;  %v5457_v51 = vld [vmem:[%s6432_s4 + $0x1a8] sm:$0xff]  }
 0x2a6   : > { %5054 = vmatprep.mubr.bf16.mxu1 %v3033_v62  ;;  %5059 = vmatpush3.bf16.msra.mxu1 %v5452_v39  ;;  %v5462_v62 = vld [vmem:[%s6432_s4 + $0x1d0] sm:$0xff]  }
 0x2a7   : > { %5060 = vmatprep.subr.bf16.mxu1 %v5453_v43 }
 0x2aa   : > { %5061 = vmatpush3.bf16.msra.mxu1 %v5453_v43 }
 0x2ab   : > { %5062 = vmatprep.subr.bf16.mxu1 %v5454_v49 }
 0x2ad   : > { %5055 = vmatmul.mubr.bf16.gmra.mrb[4].mxu1 %v3034_v54 }
 0x2ae   : > { %5063 = vmatpush3.bf16.msra.mxu1 %v5454_v49  ;;  %5074 = vmatprep.mubr.bf16.mxu1 %v6073_v5  ;;  %v3185_v5 = vpack.c.bf16 %v5496_v0, %v6181_v1  ;;  %v5465_v0 = vld [vmem:[%s6432_s4 + $0x1e8] sm:$0xff]  }
 0x2af   : > { %5064 = vmatprep.subr.bf16.mxu1 %v5455_v47 }
 0x2b2   : > { %5065 = vmatpush3.bf16.msra.mxu1 %v5455_v47 }
 0x2b3   : > { %5066 = vmatprep.subr.bf16.mxu1 %v5456_v48 }
 0x2b6   : > { %5067 = vmatpush3.bf16.msra.mxu1 %v5456_v48 }
 0x2b7   : > { %5068 = vmatprep.subr.bf16.mxu1 %v5457_v51 }
 0x2ba   : > { %5069 = vmatpush3.bf16.msra.mxu1 %v5457_v51 }
 0x2bb   : > { %5070 = vmatprep.subr.bf16.mxu1 %v5458_v56 }
 0x2be   : > { %5071 = vmatpush3.bf16.msra.mxu1 %v5458_v56 }
 0x2bf   : > { %5072 = vmatprep.subr.bf16.mxu1 %v5459_v57 }
 0x2c2   : > { %5073 = vmatpush3.bf16.msra.mxu1 %v5459_v57 }
 0x2c3   : > { %5082 = vmatprep.subr.bf16.mxu1 %v5460_v59 }
 0x2c5   : > { %5075 = vmatmul.mubr.bf16.vlgmr.msra.gmra.mrb[0].mxu1 %v6082_v8  ;;  %v5464_v8 = vld [vmem:[%s6432_s4 + $0x1e0] sm:$0xff]  }
 0x2c6   : > { %5078 = vmatprep.mubr.bf16.mxu1 %v6095_v13  ;;  %5083 = vmatpush3.bf16.msra.mxu1 %v5460_v59  ;;  %v5466_v13 = vld [vmem:[%s6432_s4 + $0x1f0] sm:$0xff]  }
 0x2c7   : > { %5084 = vmatprep.subr.bf16.mxu1 %v5461_v60 }
 0x2ca   : > { %5085 = vmatpush3.bf16.msra.mxu1 %v5461_v60 }
 0x2cb   : > { %5086 = vmatprep.subr.bf16.mxu1 %v5462_v62 }
 0x2cd   : > { %5079 = vmatmul.mubr.bf16.gmra.mrb[4].mxu1 %v3185_v5 }
 0x2ce   : > { %5087 = vmatpush3.bf16.msra.mxu1 %v5462_v62  ;;  %5098 = vmatprep.mubr.bf16.mxu1 %v5991_v29  ;;  %v5467_v29 = vld [vmem:[%s6432_s4 + $0x1f8] sm:$0xff]  }
 0x2cf   : > { %5088 = vmatprep.subr.bf16.mxu1 %v5463_v24 }
 0x2d2   : > { %5089 = vmatpush3.bf16.msra.mxu1 %v5463_v24 }
 0x2d3   : > { %5090 = vmatprep.subr.bf16.mxu1 %v5464_v8 }
 0x2d6   : > { %5091 = vmatpush3.bf16.msra.mxu1 %v5464_v8 }
 0x2d7   : > { %5092 = vmatprep.subr.bf16.mxu1 %v5465_v0 }
 0x2da   : > { %5093 = vmatpush3.bf16.msra.mxu1 %v5465_v0 }
 0x2db   : > { %5094 = vmatprep.subr.bf16.mxu1 %v5466_v13 }
 0x2de   : > { %5095 = vmatpush3.bf16.msra.mxu1 %v5466_v13 }
 0x2df   : > { %5096 = vmatprep.subr.bf16.mxu1 %v5467_v29 }
 0x2e2   : > { %5097 = vmatpush3.bf16.msra.mxu1 %v5467_v29 }
 0x2e3   : > { %5106 = vmatprep.subr.bf16.mxu1 %v5468_v27 }
 0x2e5   : > { %5099 = vmatmul.mubr.bf16.vlgmr.msra.gmra.mrb[0].mxu1 %v6014_v44  ;;  %v5476_v44 = vld [vmem:[%s6432_s4 + $0x220] sm:$0xff]  }
 0x2e6   : > { %5102 = vmatprep.mubr.bf16.mxu1 %v6033_v52  ;;  %5107 = vmatpush3.bf16.msra.mxu1 %v5468_v27  ;;  %v5480_v52 = vld [vmem:[%s6432_s4 + $0x230] sm:$0xff]  }
 0x2e7   : > { %5108 = vmatprep.subr.bf16.mxu1 %v5470_v30 }
 0x2ea   : > { %5109 = vmatpush3.bf16.msra.mxu1 %v5470_v30 }
 0x2eb   : > { %5110 = vmatprep.subr.bf16.mxu1 %v5472_v32 }
 0x2ed   : > { %5103 = vmatmul.mubr.bf16.gmra.mrb[4].mxu1 %v3335_v35 }
 0x2ee   : > { %5111 = vmatpush3.bf16.msra.mxu1 %v5472_v32  ;;  %5122 = vmatprep.mubr.bf16.mxu1 %v6119_v25  ;;  %v5482_v25 = vld [vmem:[%s6432_s4 + $0x238] sm:$0xff]  }
 0x2ef   : > { %5112 = vmatprep.subr.bf16.mxu1 %v5474_v36 }
 0x2f2   : > { %5113 = vmatpush3.bf16.msra.mxu1 %v5474_v36 }
 0x2f3   : > { %5114 = vmatprep.subr.bf16.mxu1 %v5476_v44 }
 0x2f6   : > { %5115 = vmatpush3.bf16.msra.mxu1 %v5476_v44 }
 0x2f7   : > { %5116 = vmatprep.subr.bf16.mxu1 %v5478_v42 }
 0x2fa   : > { %5117 = vmatpush3.bf16.msra.mxu1 %v5478_v42 }
 0x2fb   : > { %5118 = vmatprep.subr.bf16.mxu1 %v5480_v52 }
 0x2fe   : > { %5119 = vmatpush3.bf16.msra.mxu1 %v5480_v52 }
 0x2ff   : > { %5120 = vmatprep.subr.bf16.mxu1 %v5482_v25 }
 0x302   : > { %5121 = vmatpush3.bf16.msra.mxu1 %v5482_v25 }
 0x303   : > { %5154 = vmatprep.subr.bf16.mxu1 %v6167_v58 }
 0x305   : > { %5123 = vmatmul.mubr.bf16.vlgmr.msra.gmra.mrb[0].mxu1 %v6126_v28  ;;  %v5487_v28 = vld [vmem:[%s5578_s27 + $0x108] ss:$8 sps:$4 sm:$0xff]  }
 0x306   : > { %5126 = vmatprep.mubr.bf16.mxu1 %v6137_v33  ;;  %5162 = vmatpush3.bf16.msra.mxu1 %v6167_v58  ;;  %v4465_v58 = vld [vmem:[%s6436_s8] ss:$0 sm:$0xff] }
 0x307   : > { %5155 = vmatprep.subr.bf16.mxu1 %v6179_v46 }
 0x30a   : > { %5163 = vmatpush3.bf16.msra.mxu1 %v6179_v46  ;;  %v4466_v46 = vld [vmem:[%s6437_s9] ss:$0 sm:$0xff] }
 0x30b   : > { %5156 = vmatprep.subr.bf16.mxu1 %v6193_v4 }
 0x30d   : > { %5127 = vmatmul.mubr.bf16.gmra.mrb[4].mxu1 %v3485_v41 }
 0x30e   : > { %5164 = vmatpush3.bf16.msra.mxu1 %v6193_v4  ;;  %5150 = vmatprep.mubr.bf16.mxu1 %v5486_v40  ;;  %v4444_v4 = vld [vmem:[%s6434_s6] ss:$0 sm:$0xff] }
 0x30f   : > { %5157 = vmatprep.subr.bf16.mxu1 %v6206_v7 }
 0x312   : > { %5165 = vmatpush3.bf16.msra.mxu1 %v6206_v7  ;;  %v5148_v33 = vpop.f32.mrb[8].mxu0 }
 0x313   : > { %5158 = vmatprep.subr.bf16.mxu1 %v6216_v21  ;;  %v3784_v45 = vpop.f32.mrb[9].mxu0  ;;  %v3824_v61 = vmul.f32 %v5148_v33, %v4465_v58 }
 0x314   : > { %v5149_v53 = vpop.f32.mrb[10].mxu0  ;;  %v3822_v1 = vmul.f32 %v4465_v58, %v3784_v45 }
 0x315   : > { %v3787_v55 = vpop.f32.mrb[11].mxu0  ;;  %v3825_v2 = vmul.f32 %v5149_v53, %v4465_v58  ;;  %v3839_v18 = vadd.f32 %v4466_v46, %v3824_v61 }
 0x316   : > { %5166 = vmatpush3.bf16.msra.mxu1 %v6216_v21  ;;  %v3823_v6 = vmul.f32 %v4465_v58, %v3787_v55 }
 0x317   : > { %5159 = vmatprep.subr.bf16.mxu1 %v6226_v9 }
 0x318   : > { %v3838_v22 = vadd.f32 %v4466_v46, %v3823_v6 }
 0x31a   : > { %5167 = vmatpush3.bf16.msra.mxu1 %v6226_v9  ;;  %v3837_v9 = vadd.f32 %v4466_v46, %v3822_v1 }
 0x31b   : > { %5160 = vmatprep.subr.bf16.mxu1 %v6236_v11 }
 0x31e   : > { %5168 = vmatpush3.bf16.msra.mxu1 %v6236_v11 }
 0x31f   : > { %5161 = vmatprep.subr.bf16.mxu1 %v6246_v14 }
 0x322   : > { %5169 = vmatpush3.bf16.msra.mxu1 %v6246_v14  ;;  %v3840_v14 = vadd.f32 %v4466_v46, %v3825_v2 }
 0x325   : > { %5151 = vmatmul.mubr.bf16.vlgmr.msra.gmra.mrb[8].mxu1 %v5487_v28 }
 0x3d8   : > { %v5124_v3 = vpop.f32.mrb[0].mxu1 }
 0x3d9   : > { %v3633_v7 = vmul.f32 %v5124_v3, %v4443_v63  ;;  %v3585_v21 = vpop.f32.mrb[1].mxu1 }
 0x3da   : > { %v3631_v31 = vmul.f32 %v4443_v63, %v3585_v21  ;;  %v5125_v10 = vpop.f32.mrb[2].mxu1 }
 0x3db   : > { %v3648_v11 = vadd.f32 %v4444_v4, %v3633_v7  ;;  %v3634_v12 = vmul.f32 %v5125_v10, %v4443_v63  ;;  %v3588_v16 = vpop.f32.mrb[3].mxu1 }
 0x3dc   : > { %v3646_v17 = vadd.f32 %v4444_v4, %v3631_v31  ;;  %v3632_v19 = vmul.f32 %v4443_v63, %v3588_v16 }
 0x3dd   : > { %v3847_v23 = vadd.f32 %v3839_v18, %v3648_v11  ;;  %v3649_v15 = vadd.f32 %v4444_v4, %v3634_v12 }
 0x3de   : > { %v3845_v20 = vadd.f32 %v3837_v9, %v3646_v17  ;;  %v3647_v26 = vadd.f32 %v4444_v4, %v3632_v19 }
 0x3df   : > { %v3855_v37 = vmax.f32 %v3847_v23, 0.0  ;;  %v3848_v39 = vadd.f32 %v3840_v14, %v3649_v15 }
 0x3e0   : > { %v3853_v43 = vmax.f32 %v3845_v20, 0.0  ;;  %v3846_v49 = vadd.f32 %v3838_v22, %v3647_v26  ;;  %v5128_v50 = vpop.f32.mrb[4].mxu1 }
 0x3e1   : > { %3863 = vst [vmem:[%s6415_s12 + $0x10] sm:$0xff] %v3855_v37  ;;  %v3856_v54 = vmax.f32 %v3848_v39, 0.0  ;;  %v3601_v47 = vpop.f32.mrb[5].mxu1  ;;  %v3637_v57 = vmul.f32 %v5128_v50, %v4443_v63 }
 0x3e2   : > { %3861 = vst [vmem:[%s6415_s12] sm:$0xff] %v3853_v43  ;;  %v3854_v48 = vmax.f32 %v3846_v49, 0.0  ;;  %v5129_v51 = vpop.f32.mrb[6].mxu1  ;;  %v3635_v59 = vmul.f32 %v4443_v63, %v3601_v47 }
 0x3e3   : > { %3864 = vst [vmem:[%s6415_s12 + $0x18] sm:$0xff] %v3856_v54  ;;  %v3604_v56 = vpop.f32.mrb[7].mxu1  ;;  %v3638_v62 = vmul.f32 %v5129_v51, %v4443_v63  ;;  %v3652_v29 = vadd.f32 %v4444_v4, %v3637_v57 }
 0x3e4   : > { %3862 = vst [vmem:[%s6415_s12 + $0x8] sm:$0xff] %v3854_v48  ;;  %v3636_v8 = vmul.f32 %v4443_v63, %v3604_v56  ;;  %v3650_v34 = vadd.f32 %v4444_v4, %v3635_v59 }
 0x3e5   : > { %v3653_v44 = vadd.f32 %v4444_v4, %v3638_v62 }
 0x3e6   : > { %v3651_v25 = vadd.f32 %v4444_v4, %v3636_v8 }
 0x3f8   : > { %v5152_v60 = vpop.f32.mrb[8].mxu1 }
 0x3f9   : > { %v3828_v5 = vmul.f32 %v5152_v60, %v4465_v58  ;;  %v3800_v24 = vpop.f32.mrb[9].mxu1 }
 0x3fa   : > { %v3826_v0 = vmul.f32 %v4465_v58, %v3800_v24  ;;  %v5153_v13 = vpop.f32.mrb[10].mxu1 }
 0x3fb   : > { %v3843_v27 = vadd.f32 %v4466_v46, %v3828_v5  ;;  %v3829_v30 = vmul.f32 %v5153_v13, %v4465_v58  ;;  %v3803_v32 = vpop.f32.mrb[11].mxu1 }
 0x3fc   : > { %v3841_v35 = vadd.f32 %v4466_v46, %v3826_v0  ;;  %v3827_v36 = vmul.f32 %v4465_v58, %v3803_v32 }
 0x3fd   : > { %v3851_v42 = vadd.f32 %v3843_v27, %v3652_v29  ;;  %v3844_v52 = vadd.f32 %v4466_v46, %v3829_v30 }
 0x3fe   : > { %v3849_v38 = vadd.f32 %v3841_v35, %v3650_v34  ;;  %v3842_v40 = vadd.f32 %v4466_v46, %v3827_v36 }
 0x3ff   : > { %v3859_v41 = vmax.f32 %v3851_v42, 0.0  ;;  %v3852_v28 = vadd.f32 %v3844_v52, %v3653_v44 }
 0x400   : > { %v3857_v33 = vmax.f32 %v3849_v38, 0.0  ;;  %v3850_v45 = vadd.f32 %v3842_v40, %v3651_v25 }
 0x401   : > { %3867 = vst [vmem:[%s6415_s12 + $0x30] sm:$0xff] %v3859_v41  ;;  %v3860_v53 = vmax.f32 %v3852_v28, 0.0 }
 0x402   : > { %3865 = vst [vmem:[%s6415_s12 + $0x20] sm:$0xff] %v3857_v33  ;;  %v3858_v55 = vmax.f32 %v3850_v45, 0.0 }
 0x403   : > { %3868 = vst [vmem:[%s6415_s12 + $0x38] sm:$0xff] %v3860_v53 }
 0x404   : > { %3866 = vst [vmem:[%s6415_s12 + $0x28] sm:$0xff] %v3858_v55 }
 0x405 PF: > { %s20_s13 = sadd.s32 1, %s5494_s13  }
 0x406   : > { %p17_p5 = scmp.ge.s32.totalorder %s20_s13, 4  }
 0x408   :  { %19 = sbr.rel (!%p17_p5) target bundleno = 1 (0x1), region = 113 }

</bundles_post_ra>
